<compile_context>
chip_gen: v5e
topology: v5e:2x2
jax: 0.10.0
libtpu: 0.0.40
codegen_flags: <defaults>
</compile_context>

<pallas_src>
import jax
import jax.numpy as jnp
from jax.experimental import pallas as pl
from jax.experimental.pallas import tpu as pltpu


def _mlp_kernel(x_ref, w1_ref, b1_ref, w2_ref, b2_ref, o_ref):
    # Linear(dim -> hidden): MXU matmul, f32 accumulate, fused bias + ReLU.
    h = jnp.dot(x_ref[...], w1_ref[...], preferred_element_type=jnp.float32)
    h = jnp.maximum(h + b1_ref[...], 0.0)            # (tm, hidden) + (1, hidden)
    # Linear(hidden -> proj): cast h back to the weight compute dtype so the
    # second matmul is also MXU-native; accumulation stays f32.
    out = jnp.dot(h.astype(w2_ref.dtype), w2_ref[...],
                  preferred_element_type=jnp.float32)
    o_ref[...] = (out + b2_ref[...]).astype(o_ref.dtype)


def _pick_row_tile(B):
    # One grid step when the whole batch fits comfortably in VMEM; otherwise
    # 256-row tiles (MXU-wide, amortizes ~0.35us/step pipeline overhead and
    # gives >=2 parallel steps for v7x's two TensorCores).
    if B <= 256:
        return B
    for t in (256, 128, 64, 32, 16, 8):
        if B % t == 0:
            return t
    return B


def mlp_forward(x, w1, b1, w2, b2, *, tm=None, compute_dtype=jnp.bfloat16):
    B, dim = x.shape
    hidden = w1.shape[1]
    proj = w2.shape[1]
    out_dtype = x.dtype

    if tm is None:
        tm = _pick_row_tile(B)
    assert B % tm == 0, "batch must be divisible by row tile"

    # bf16 inputs/weights -> native MXU throughput + half the dominant weight
    # HBM/VMEM traffic; biases stay f32 (added to the f32 accumulator).
    x_c = x.astype(compute_dtype)
    w1_c = w1.astype(compute_dtype)
    w2_c = w2.astype(compute_dtype)
    b1_2d = b1.reshape(1, hidden).astype(jnp.float32)
    b2_2d = b2.reshape(1, proj).astype(jnp.float32)

    itemsize = jnp.dtype(compute_dtype).itemsize
    out_itemsize = jnp.dtype(out_dtype).itemsize

    flops = 2 * B * dim * hidden + 2 * B * hidden * proj
    bytes_accessed = (B * dim * itemsize
                      + dim * hidden * itemsize
                      + hidden * proj * itemsize
                      + (hidden + proj) * 4
                      + B * proj * out_itemsize)
    cost = pl.CostEstimate(flops=flops, transcendentals=0,
                           bytes_accessed=bytes_accessed)

    # VMEM budget: single-buffered weights + biases, double-buffered x/out
    # tiles, plus the (tm, hidden)/(tm, proj) f32 intermediates, with headroom.
    # Capped below v7x's 64 MiB per-TC VMEM.
    # TODO(synk): at production BYOL widths where W1/W2 exceed this budget,
    # add a K-grid axis over `dim` with a (tm, hidden) f32 VMEM accumulator
    # (init/finalize via pl.when) instead of keeping weights fully resident.
    vmem_est = ((dim * hidden + hidden * proj) * itemsize
                + (hidden + proj) * 4
                + 2 * tm * dim * itemsize
                + 2 * tm * proj * out_itemsize
                + tm * hidden * 4 + tm * proj * 4)
    vmem_limit = int(min(max(vmem_est + (4 << 20), 32 << 20), 60 << 20))

    def build(single_buffer_residents):
        # Resident operands: constant index_map -> nothing to prefetch, so a
        # single buffer halves their VMEM footprint.
        res = ({"pipeline_mode": pl.Buffered(1)}
               if single_buffer_residents else {})
        grid_spec = pltpu.PrefetchScalarGridSpec(
            num_scalar_prefetch=0,
            grid=(B // tm,),
            in_specs=[
                pl.BlockSpec((tm, dim), lambda i: (i, 0)),              # x tile
                pl.BlockSpec((dim, hidden), lambda i: (0, 0), **res),   # W1
                pl.BlockSpec((1, hidden), lambda i: (0, 0), **res),     # b1
                pl.BlockSpec((hidden, proj), lambda i: (0, 0), **res),  # W2
                pl.BlockSpec((1, proj), lambda i: (0, 0), **res),       # b2
            ],
            out_specs=pl.BlockSpec((tm, proj), lambda i: (i, 0)),
        )
        return pl.pallas_call(
            _mlp_kernel,
            out_shape=jax.ShapeDtypeStruct((B, proj), out_dtype),
            grid_spec=grid_spec,
            compiler_params=pltpu.CompilerParams(
                dimension_semantics=("parallel",),
                vmem_limit_bytes=vmem_limit),
            cost_estimate=cost,
        )

    try:
        return build(True)(x_c, w1_c, b1_2d, w2_c, b2_2d)
    except Exception:
        # Fallback: default (double-buffered) resident specs if Buffered(1) is
        # not accepted by this jax version's outer pallas_call pipeline.
        return build(False)(x_c, w1_c, b1_2d, w2_c, b2_2d)


def mlp_reference(x, w1, b1, w2, b2):
    h = jnp.maximum(x @ w1 + b1, 0.0)
    return h @ w2 + b2


if __name__ == "__main__":
    # Small shapes consistent with MLP(dim, projection_size, hidden_size).
    B, dim, hidden, proj = 16, 256, 512, 128

    key = jax.random.PRNGKey(0)
    kx, kw1, kb1, kw2, kb2 = jax.random.split(key, 5)

    # Deterministic synthetic parameters (PyTorch Linear weight (hidden, dim)
    # stored transposed here as (dim, hidden) for row-major matmul).
    x = jax.random.normal(kx, (B, dim), dtype=jnp.float32)
    w1 = jax.random.normal(kw1, (dim, hidden), dtype=jnp.float32) * (1.0 / dim ** 0.5)
    b1 = jax.random.normal(kb1, (hidden,), dtype=jnp.float32) * 0.01
    w2 = jax.random.normal(kw2, (hidden, proj), dtype=jnp.float32) * (1.0 / hidden ** 0.5)
    b2 = jax.random.normal(kb2, (proj,), dtype=jnp.float32) * 0.01

    ref = mlp_reference(x, w1, b1, w2, b2)

    # f32 compute path: tight structural check against the reference.
    out_f32 = jax.block_until_ready(
        mlp_forward(x, w1, b1, w2, b2, compute_dtype=jnp.float32))
    assert out_f32.shape == (B, proj)
    assert jnp.allclose(out_f32, ref, atol=1e-4, rtol=1e-4), "f32 path mismatch"

    # Default bf16-input / f32-accumulate path: relaxed tolerance.
    out = jax.block_until_ready(mlp_forward(x, w1, b1, w2, b2))
    assert out.shape == (B, proj)
    assert jnp.allclose(out, ref, atol=3e-2, rtol=3e-2), "bf16 path mismatch"

    print("KERNEL_OK")
</pallas_src>

<mosaic_0001>
module attributes {stable_mosaic.version = 11 : i64} {
  func.func @_mlp_kernel(%arg0: i32, %arg1: memref<16x256xf32, #tpu.memory_space<vmem>>, %arg2: memref<256x512xf32, #tpu.memory_space<vmem>>, %arg3: memref<1x512xf32, #tpu.memory_space<vmem>>, %arg4: memref<512x128xf32, #tpu.memory_space<vmem>>, %arg5: memref<1x128xf32, #tpu.memory_space<vmem>>, %arg6: memref<16x128xf32, #tpu.memory_space<vmem>>) attributes {dimension_semantics = [#tpu.dimension_semantics<parallel>], iteration_bounds = array<i64: 1>, scalar_prefetch = 0 : i64, scratch_operands = 0 : i64, tpu.core_type = #tpu.core_type<tc>, window_params = [{transform_indices = @transform_0, window_bounds = array<i64: 16, 256>}, {pipeline_mode = #tpu.pipeline_mode<synchronous>, transform_indices = @transform_1, window_bounds = array<i64: 256, 512>}, {pipeline_mode = #tpu.pipeline_mode<synchronous>, transform_indices = @transform_2, window_bounds = array<i64: 1, 512>}, {pipeline_mode = #tpu.pipeline_mode<synchronous>, transform_indices = @transform_3, window_bounds = array<i64: 512, 128>}, {pipeline_mode = #tpu.pipeline_mode<synchronous>, transform_indices = @transform_4, window_bounds = array<i64: 1, 128>}, {transform_indices = @transform_5, window_bounds = array<i64: 16, 128>}]} {
    %c0 = arith.constant 0 : index
    %c0_0 = arith.constant 0 : index
    %0 = vector.load %arg1[%c0, %c0_0] : memref<16x256xf32, #tpu.memory_space<vmem>>, vector<16x256xf32>
    %c0_1 = arith.constant 0 : index
    %c0_2 = arith.constant 0 : index
    %1 = vector.load %arg2[%c0_1, %c0_2] : memref<256x512xf32, #tpu.memory_space<vmem>>, vector<256x512xf32>
    %cst = arith.constant dense<0.000000e+00> : vector<16x512xf32>
    %2 = tpu.matmul %0, %1, %cst {dimension_numbers = #tpu.dot_dimension_numbers<[1], [0], [0], [1], [0, 0, 1, 1], [], []>} : vector<16x256xf32>, vector<256x512xf32>, vector<16x512xf32> -> vector<16x512xf32>
    %c0_3 = arith.constant 0 : index
    %c0_4 = arith.constant 0 : index
    %3 = vector.load %arg3[%c0_3, %c0_4] : memref<1x512xf32, #tpu.memory_space<vmem>>, vector<1x512xf32>
    %4 = vector.broadcast %3 : vector<1x512xf32> to vector<16x512xf32>
    %5 = arith.addf %2, %4 : vector<16x512xf32>
    %cst_5 = arith.constant 0.000000e+00 : f32
    %6 = vector.broadcast %cst_5 : f32 to vector<16x512xf32>
    %7 = arith.maximumf %5, %6 : vector<16x512xf32>
    %c0_6 = arith.constant 0 : index
    %c0_7 = arith.constant 0 : index
    %8 = vector.load %arg4[%c0_6, %c0_7] : memref<512x128xf32, #tpu.memory_space<vmem>>, vector<512x128xf32>
    %cst_8 = arith.constant dense<0.000000e+00> : vector<16x128xf32>
    %9 = tpu.matmul %7, %8, %cst_8 {dimension_numbers = #tpu.dot_dimension_numbers<[1], [0], [0], [1], [0, 0, 1, 1], [], []>} : vector<16x512xf32>, vector<512x128xf32>, vector<16x128xf32> -> vector<16x128xf32>
    %c0_9 = arith.constant 0 : index
    %c0_10 = arith.constant 0 : index
    %10 = vector.load %arg5[%c0_9, %c0_10] : memref<1x128xf32, #tpu.memory_space<vmem>>, vector<1x128xf32>
    %11 = vector.broadcast %10 : vector<1x128xf32> to vector<16x128xf32>
    %12 = arith.addf %9, %11 : vector<16x128xf32>
    %c0_11 = arith.constant 0 : index
    %c0_12 = arith.constant 0 : index
    %13 = vector.load %arg6[%c0_11, %c0_12] : memref<16x128xf32, #tpu.memory_space<vmem>>, vector<16x128xf32>
    tpu.vector_store %arg6[%c0_11, %c0_12], %12 {strides = array<i32>} : memref<16x128xf32, #tpu.memory_space<vmem>>, vector<16x128xf32>,
    return
  }
  func.func @transform_0(%arg0: i32) -> (i32, i32) {
    %c0_i32 = arith.constant 0 : i32
    %c0_i32_0 = arith.constant 0 : i32
    return %arg0, %c0_i32 : i32, i32
  }
  func.func @transform_1(%arg0: i32) -> (i32, i32) {
    %c0_i32 = arith.constant 0 : i32
    %c0_i32_0 = arith.constant 0 : i32
    %c0_i32_1 = arith.constant 0 : i32
    return %c0_i32, %c0_i32_0 : i32, i32
  }
  func.func @transform_2(%arg0: i32) -> (i32, i32) {
    %c0_i32 = arith.constant 0 : i32
    %c0_i32_0 = arith.constant 0 : i32
    %c0_i32_1 = arith.constant 0 : i32
    return %c0_i32, %c0_i32_0 : i32, i32
  }
  func.func @transform_3(%arg0: i32) -> (i32, i32) {
    %c0_i32 = arith.constant 0 : i32
    %c0_i32_0 = arith.constant 0 : i32
    %c0_i32_1 = arith.constant 0 : i32
    return %c0_i32, %c0_i32_0 : i32, i32
  }
  func.func @transform_4(%arg0: i32) -> (i32, i32) {
    %c0_i32 = arith.constant 0 : i32
    %c0_i32_0 = arith.constant 0 : i32
    %c0_i32_1 = arith.constant 0 : i32
    return %c0_i32, %c0_i32_0 : i32, i32
  }
  func.func @transform_5(%arg0: i32) -> (i32, i32) {
    %c0_i32 = arith.constant 0 : i32
    %c0_i32_0 = arith.constant 0 : i32
    return %arg0, %c0_i32 : i32, i32
  }
}

module attributes {stable_mosaic.version = 11 : i64} {
  func.func @_mlp_kernel(%arg0: i32, %arg1: memref<16x256xf32, #tpu.memory_space<vmem>>, %arg2: memref<256x512xf32, #tpu.memory_space<vmem>>, %arg3: memref<1x512xf32, #tpu.memory_space<vmem>>, %arg4: memref<512x128xf32, #tpu.memory_space<vmem>>, %arg5: memref<1x128xf32, #tpu.memory_space<vmem>>, %arg6: memref<16x128xf32, #tpu.memory_space<vmem>>) attributes {dimension_semantics = [#tpu.dimension_semantics<parallel>], iteration_bounds = array<i64: 1>, scalar_prefetch = 0 : i64, scratch_operands = 0 : i64, tpu.core_type = #tpu.core_type<tc>, window_params = [{transform_indices = @transform_0, window_bounds = array<i64: 16, 256>}, {pipeline_mode = #tpu.pipeline_mode<synchronous>, transform_indices = @transform_1, window_bounds = array<i64: 256, 512>}, {pipeline_mode = #tpu.pipeline_mode<synchronous>, transform_indices = @transform_2, window_bounds = array<i64: 1, 512>}, {pipeline_mode = #tpu.pipeline_mode<synchronous>, transform_indices = @transform_3, window_bounds = array<i64: 512, 128>}, {pipeline_mode = #tpu.pipeline_mode<synchronous>, transform_indices = @transform_4, window_bounds = array<i64: 1, 128>}, {transform_indices = @transform_5, window_bounds = array<i64: 16, 128>}]} {
    %c0 = arith.constant 0 : index
    %c0_0 = arith.constant 0 : index
    %0 = vector.load %arg1[%c0, %c0_0] : memref<16x256xf32, #tpu.memory_space<vmem>>, vector<16x256xf32>
    %c0_1 = arith.constant 0 : index
    %c0_2 = arith.constant 0 : index
    %1 = vector.load %arg2[%c0_1, %c0_2] : memref<256x512xf32, #tpu.memory_space<vmem>>, vector<256x512xf32>
    %cst = arith.constant dense<0.000000e+00> : vector<16x512xf32>
    %2 = tpu.matmul %0, %1, %cst {dimension_numbers = #tpu.dot_dimension_numbers<[1], [0], [0], [1], [0, 0, 1, 1], [], []>} : vector<16x256xf32>, vector<256x512xf32>, vector<16x512xf32> -> vector<16x512xf32>
    %c0_3 = arith.constant 0 : index
    %c0_4 = arith.constant 0 : index
    %3 = vector.load %arg3[%c0_3, %c0_4] : memref<1x512xf32, #tpu.memory_space<vmem>>, vector<1x512xf32>
    %4 = vector.broadcast %3 : vector<1x512xf32> to vector<16x512xf32>
    %5 = arith.addf %2, %4 : vector<16x512xf32>
    %cst_5 = arith.constant 0.000000e+00 : f32
    %6 = vector.broadcast %cst_5 : f32 to vector<16x512xf32>
    %7 = arith.maximumf %5, %6 : vector<16x512xf32>
    %c0_6 = arith.constant 0 : index
    %c0_7 = arith.constant 0 : index
    %8 = vector.load %arg4[%c0_6, %c0_7] : memref<512x128xf32, #tpu.memory_space<vmem>>, vector<512x128xf32>
    %cst_8 = arith.constant dense<0.000000e+00> : vector<16x128xf32>
    %9 = tpu.matmul %7, %8, %cst_8 {dimension_numbers = #tpu.dot_dimension_numbers<[1], [0], [0], [1], [0, 0, 1, 1], [], []>} : vector<16x512xf32>, vector<512x128xf32>, vector<16x128xf32> -> vector<16x128xf32>
    %c0_9 = arith.constant 0 : index
    %c0_10 = arith.constant 0 : index
    %10 = vector.load %arg5[%c0_9, %c0_10] : memref<1x128xf32, #tpu.memory_space<vmem>>, vector<1x128xf32>
    %11 = vector.broadcast %10 : vector<1x128xf32> to vector<16x128xf32>
    %12 = arith.addf %9, %11 : vector<16x128xf32>
    %c0_11 = arith.constant 0 : index
    %c0_12 = arith.constant 0 : index
    %13 = vector.load %arg6[%c0_11, %c0_12] : memref<16x128xf32, #tpu.memory_space<vmem>>, vector<16x128xf32>
    tpu.vector_store %arg6[%c0_11, %c0_12], %12 {strides = array<i32>} : memref<16x128xf32, #tpu.memory_space<vmem>>, vector<16x128xf32>,
    return
  }
  func.func @transform_0(%arg0: i32) -> (i32, i32) {
    %c0_i32 = arith.constant 0 : i32
    %c0_i32_0 = arith.constant 0 : i32
    return %arg0, %c0_i32 : i32, i32
  }
  func.func @transform_1(%arg0: i32) -> (i32, i32) {
    %c0_i32 = arith.constant 0 : i32
    %c0_i32_0 = arith.constant 0 : i32
    %c0_i32_1 = arith.constant 0 : i32
    return %c0_i32, %c0_i32_0 : i32, i32
  }
  func.func @transform_2(%arg0: i32) -> (i32, i32) {
    %c0_i32 = arith.constant 0 : i32
    %c0_i32_0 = arith.constant 0 : i32
    %c0_i32_1 = arith.constant 0 : i32
    return %c0_i32, %c0_i32_0 : i32, i32
  }
  func.func @transform_3(%arg0: i32) -> (i32, i32) {
    %c0_i32 = arith.constant 0 : i32
    %c0_i32_0 = arith.constant 0 : i32
    %c0_i32_1 = arith.constant 0 : i32
    return %c0_i32, %c0_i32_0 : i32, i32
  }
  func.func @transform_4(%arg0: i32) -> (i32, i32) {
    %c0_i32 = arith.constant 0 : i32
    %c0_i32_0 = arith.constant 0 : i32
    %c0_i32_1 = arith.constant 0 : i32
    return %c0_i32, %c0_i32_0 : i32, i32
  }
  func.func @transform_5(%arg0: i32) -> (i32, i32) {
    %c0_i32 = arith.constant 0 : i32
    %c0_i32_0 = arith.constant 0 : i32
    return %arg0, %c0_i32 : i32, i32
  }
}

</mosaic_0001>

<bundles_post_ra>
// kernel: tpu_custom_call.1
= control target key start
LH: loop header
LB: loop body
LE: loop exit
PB: predicated region body
PF: predicated region fallthrough
CT: control target
= control target key end

     0   :  { %10 = vsyncpa [#allocation3], 0  ;;  %s828_s0 = inlined_call_operand.hbm [shape: f32[16,256], index: 0, kind: input, shape index: {}]   ;;  %s829_s1 = inlined_call_operand.hbm [shape: f32[256,512], index: 1, kind: input, shape index: {}]   ;;  %s830_s2 = inlined_call_operand.hbm [shape: f32[1,512], index: 2, kind: input, shape index: {}]   ;;  %s831_s3 = inlined_call_operand.hbm [shape: f32[512,128], index: 3, kind: input, shape index: {}]   ;;  %s832_s4 = inlined_call_operand.vmem [shape: f32[1,128], index: 4, kind: input, shape index: {}]   ;;  %s833_s5 = inlined_call_operand.hbm [shape: f32[16,128], index: 5, kind: output, shape index: {}]  }
   0x1   :  { %11 = vsyncpa [#allocation6], 0 }
   0x2   :  { %12 = vsyncpa [#allocation9], 0  ;;  %s31_s20 = sshll.u32 %s829_s1, 4  ;;  %s32_s20 = int_to_ptr.hbm [resolvable:$true] %s31_s20 }
   0x3   :  { %13 = vsyncpa [#allocation4], 0  ;;  %s739_s21 = smov [#allocation5]   ;;  %s18_s25 = sshll.u32 %s828_s0, 4  ;;  %s19_s25 = int_to_ptr.hbm [resolvable:$true] %s18_s25 }
   0x4   :  { %s33_s22 = sshll.u32 %s739_s21, 4  ;;  %s740_s26 = smov 512   ;;  %s34_s22 = int_to_ptr.vmem [resolvable:$true] %s33_s22 }
   0x5   :  { %s741_s27 = smov 32   ;;  %s742_s28 = smov [#allocation2]  }
   0x6   :  { %39 = dma.hbm_to_vmem [thread:$0]  %s32_s20, 16384, %s34_s22, [#allocation6], %s740_s26, %s740_s26, %s741_s27  }
   0x7   :  { %s20_s29 = sshll.u32 %s742_s28, 4  ;;  %s743_s30 = smov 256   ;;  %s21_s29 = int_to_ptr.vmem [resolvable:$true] %s20_s29 }
   0x8   :  { %s744_s6 = smov 16   ;;  %s45_s8 = sshll.u32 %s830_s2, 4  ;;  %s46_s8 = int_to_ptr.hbm [resolvable:$true] %s45_s8 }
   0x9   :  { %26 = dma.hbm_to_vmem [thread:$0]  %s19_s25, 512, %s21_s29, [#allocation3], %s743_s30, %s743_s30, %s744_s6  }
   0xa   :  { %s745_s9 = smov [#allocation7]   ;;  %s55_s12 = sshll.u32 %s831_s3, 4  ;;  %s56_s12 = int_to_ptr.hbm [resolvable:$true] %s55_s12 }
   0xb   :  { %s47_s10 = sshll.u32 %s745_s9, 4  ;;  %s746_s13 = smov [#allocation8]   ;;  %s48_s10 = int_to_ptr.vmem [resolvable:$true] %s47_s10 }
   0xc   :  { %50 = dma.hbm_to_vmem [thread:$0]  %s46_s8, 64, %s48_s10, [#allocation6]  }
   0xd   :  { %s57_s14 = sshll.u32 %s746_s13, 4  ;;  %s747_s15 = smov 128   ;;  %s58_s14 = int_to_ptr.vmem [resolvable:$true] %s57_s14 }
   0xe   :  { %s748_s16 = smov 8  }
   0xf   :  { %63 = dma.hbm_to_vmem [thread:$0]  %s56_s12, 8192, %s58_s14, [#allocation9], %s747_s15, %s747_s15, %s748_s16  }
  0x10   :  { %731 = dma.done.wait [#allocation3], 512  }
  0x11   :  { %732 = vsyncadd [#allocation3], 4294966784 }
  0x12   :  { %733 = dma.done.wait [#allocation6], 16448  }
  0x13   :  { %734 = vsyncadd [#allocation6], 4294950848 }
  0x14   :  { %735 = dma.done.wait [#allocation9], 8192  }
  0x15   :  { %736 = vsyncadd [#allocation9], 4294959104  ;;  %v146_v0 = vld [vmem:[#allocation5 + $0x1e0] sm:$0xff]  ;;  %v147_v1 = vld [vmem:[#allocation5 + $0x1e8] sm:$0xff]  ;;  %s749_s17 = smov [#allocation10]   ;;  %s584_s21 = sshll.u32 %s833_s5, 4  ;;  %s585_s21 = int_to_ptr.hbm [resolvable:$true] %s584_s21 }
  0x16   :  { %v142_v2 = vld [vmem:[#allocation5 + $0x1c0] sm:$0xff]  ;;  %224 = vmatpush.msra.mxu0 %v146_v0  ;;  %270 = vmatpush.msra.mxu2 %v147_v1  ;;  %v143_v4 = vld [vmem:[#allocation5 + $0x1c8] sm:$0xff]  ;;  %v148_v62 = vld [vmem:[#allocation5 + $0x1f0] sm:$0xff]  ;;  %s582_s18 = sshll.u32 %s749_s17, 4  ;;  %s583_s18 = int_to_ptr.vmem [resolvable:$true] %s582_s18 }
  0x17   :  { %v210_v3 = vld [vmem:[#allocation5 + $0x3e0] sm:$0xff]  ;;  %v211_v5 = vld [vmem:[#allocation5 + $0x3e8] sm:$0xff]  ;;  %v149_v63 = vld [vmem:[#allocation5 + $0x1f8] sm:$0xff] }
  0x18   :  { %247 = vmatpush.msra.mxu1 %v210_v3  ;;  %293 = vmatpush.msra.mxu3 %v211_v5  ;;  %v138_v6 = vld [vmem:[#allocation5 + $0x1a0] sm:$0xff]  ;;  %v139_v8 = vld [vmem:[#allocation5 + $0x1a8] sm:$0xff]  ;;  %v212_v3 = vld [vmem:[#allocation5 + $0x3f0] sm:$0xff] }
  0x19   :  { %v206_v7 = vld [vmem:[#allocation5 + $0x3c0] sm:$0xff]  ;;  %225 = vmatpush.msra.mxu0 %v142_v2  ;;  %271 = vmatpush.msra.mxu2 %v143_v4  ;;  %v207_v9 = vld [vmem:[#allocation5 + $0x3c8] sm:$0xff]  ;;  %v144_v2 = vld [vmem:[#allocation5 + $0x1d0] sm:$0xff] }
  0x1a   :  { %v202_v10 = vld [vmem:[#allocation5 + $0x3a0] sm:$0xff]  ;;  %248 = vmatpush.msra.mxu1 %v206_v7  ;;  %294 = vmatpush.msra.mxu3 %v207_v9  ;;  %v135_v12 = vld [vmem:[#allocation5 + $0x188] sm:$0xff]  ;;  %v145_v4 = vld [vmem:[#allocation5 + $0x1d8] sm:$0xff] }
  0x1b   :  { %v134_v11 = vld [vmem:[#allocation5 + $0x180] sm:$0xff]  ;;  %v203_v13 = vld [vmem:[#allocation5 + $0x3a8] sm:$0xff]  ;;  %226 = vmatpush.msra.mxu0 %v138_v6  ;;  %272 = vmatpush.msra.mxu2 %v139_v8  ;;  %v213_v5 = vld [vmem:[#allocation5 + $0x3f8] sm:$0xff] }
  0x1c   :  { %v198_v14 = vld [vmem:[#allocation5 + $0x380] sm:$0xff]  ;;  %v199_v15 = vld [vmem:[#allocation5 + $0x388] sm:$0xff]  ;;  %249 = vmatpush.msra.mxu1 %v202_v10  ;;  %295 = vmatpush.msra.mxu3 %v203_v13  ;;  %v140_v6 = vld [vmem:[#allocation5 + $0x1b0] sm:$0xff] }
  0x1d   :  { %v130_v16 = vld [vmem:[#allocation5 + $0x160] sm:$0xff]  ;;  %v131_v17 = vld [vmem:[#allocation5 + $0x168] sm:$0xff]  ;;  %227 = vmatpush.msra.mxu0 %v134_v11  ;;  %273 = vmatpush.msra.mxu2 %v135_v12  ;;  %v208_v7 = vld [vmem:[#allocation5 + $0x3d0] sm:$0xff] }
  0x1e   :  { %v194_v18 = vld [vmem:[#allocation5 + $0x360] sm:$0xff]  ;;  %v195_v19 = vld [vmem:[#allocation5 + $0x368] sm:$0xff]  ;;  %250 = vmatpush.msra.mxu1 %v198_v14  ;;  %296 = vmatpush.msra.mxu3 %v199_v15  ;;  %v141_v8 = vld [vmem:[#allocation5 + $0x1b8] sm:$0xff] }
  0x1f   :  { %v126_v20 = vld [vmem:[#allocation5 + $0x140] sm:$0xff]  ;;  %v127_v21 = vld [vmem:[#allocation5 + $0x148] sm:$0xff]  ;;  %228 = vmatpush.msra.mxu0 %v130_v16  ;;  %274 = vmatpush.msra.mxu2 %v131_v17  ;;  %v209_v9 = vld [vmem:[#allocation5 + $0x3d8] sm:$0xff] }
  0x20   :  { %v190_v22 = vld [vmem:[#allocation5 + $0x340] sm:$0xff]  ;;  %v191_v23 = vld [vmem:[#allocation5 + $0x348] sm:$0xff]  ;;  %251 = vmatpush.msra.mxu1 %v194_v18  ;;  %297 = vmatpush.msra.mxu3 %v195_v19  ;;  %v136_v10 = vld [vmem:[#allocation5 + $0x190] sm:$0xff] }
  0x21   :  { %v122_v24 = vld [vmem:[#allocation5 + $0x120] sm:$0xff]  ;;  %v123_v25 = vld [vmem:[#allocation5 + $0x128] sm:$0xff]  ;;  %229 = vmatpush.msra.mxu0 %v126_v20  ;;  %275 = vmatpush.msra.mxu2 %v127_v21  ;;  %v204_v11 = vld [vmem:[#allocation5 + $0x3b0] sm:$0xff] }
  0x22   :  { %v186_v26 = vld [vmem:[#allocation5 + $0x320] sm:$0xff]  ;;  %v187_v27 = vld [vmem:[#allocation5 + $0x328] sm:$0xff]  ;;  %252 = vmatpush.msra.mxu1 %v190_v22  ;;  %298 = vmatpush.msra.mxu3 %v191_v23  ;;  %v137_v12 = vld [vmem:[#allocation5 + $0x198] sm:$0xff] }
  0x23   :  { %v118_v28 = vld [vmem:[#allocation5 + $0x100] sm:$0xff]  ;;  %v119_v29 = vld [vmem:[#allocation5 + $0x108] sm:$0xff]  ;;  %230 = vmatpush.msra.mxu0 %v122_v24  ;;  %276 = vmatpush.msra.mxu2 %v123_v25  ;;  %v205_v13 = vld [vmem:[#allocation5 + $0x3b8] sm:$0xff] }
  0x24   :  { %v182_v30 = vld [vmem:[#allocation5 + $0x300] sm:$0xff]  ;;  %v183_v31 = vld [vmem:[#allocation5 + $0x308] sm:$0xff]  ;;  %253 = vmatpush.msra.mxu1 %v186_v26  ;;  %299 = vmatpush.msra.mxu3 %v187_v27  ;;  %v132_v14 = vld [vmem:[#allocation5 + $0x170] sm:$0xff] }
  0x25   :  { %v114_v32 = vld [vmem:[#allocation5 + $0xe0] sm:$0xff]  ;;  %v115_v33 = vld [vmem:[#allocation5 + $0xe8] sm:$0xff]  ;;  %231 = vmatpush.msra.mxu0 %v118_v28  ;;  %277 = vmatpush.msra.mxu2 %v119_v29  ;;  %v200_v15 = vld [vmem:[#allocation5 + $0x390] sm:$0xff] }
  0x26   :  { %v178_v34 = vld [vmem:[#allocation5 + $0x2e0] sm:$0xff]  ;;  %v179_v35 = vld [vmem:[#allocation5 + $0x2e8] sm:$0xff]  ;;  %254 = vmatpush.msra.mxu1 %v182_v30  ;;  %300 = vmatpush.msra.mxu3 %v183_v31  ;;  %v133_v16 = vld [vmem:[#allocation5 + $0x178] sm:$0xff] }
  0x27   :  { %v110_v36 = vld [vmem:[#allocation5 + $0xc0] sm:$0xff]  ;;  %v111_v37 = vld [vmem:[#allocation5 + $0xc8] sm:$0xff]  ;;  %232 = vmatpush.msra.mxu0 %v114_v32  ;;  %278 = vmatpush.msra.mxu2 %v115_v33  ;;  %v201_v17 = vld [vmem:[#allocation5 + $0x398] sm:$0xff] }
  0x28   :  { %v174_v38 = vld [vmem:[#allocation5 + $0x2c0] sm:$0xff]  ;;  %v175_v39 = vld [vmem:[#allocation5 + $0x2c8] sm:$0xff]  ;;  %255 = vmatpush.msra.mxu1 %v178_v34  ;;  %301 = vmatpush.msra.mxu3 %v179_v35  ;;  %v128_v18 = vld [vmem:[#allocation5 + $0x150] sm:$0xff] }
  0x29   :  { %v106_v40 = vld [vmem:[#allocation5 + $0xa0] sm:$0xff]  ;;  %v107_v41 = vld [vmem:[#allocation5 + $0xa8] sm:$0xff]  ;;  %233 = vmatpush.msra.mxu0 %v110_v36  ;;  %279 = vmatpush.msra.mxu2 %v111_v37  ;;  %v196_v19 = vld [vmem:[#allocation5 + $0x370] sm:$0xff] }
  0x2a   :  { %v170_v42 = vld [vmem:[#allocation5 + $0x2a0] sm:$0xff]  ;;  %v171_v43 = vld [vmem:[#allocation5 + $0x2a8] sm:$0xff]  ;;  %256 = vmatpush.msra.mxu1 %v174_v38  ;;  %302 = vmatpush.msra.mxu3 %v175_v39  ;;  %v129_v20 = vld [vmem:[#allocation5 + $0x158] sm:$0xff] }
  0x2b   :  { %v102_v44 = vld [vmem:[#allocation5 + $0x80] sm:$0xff]  ;;  %v103_v45 = vld [vmem:[#allocation5 + $0x88] sm:$0xff]  ;;  %234 = vmatpush.msra.mxu0 %v106_v40  ;;  %280 = vmatpush.msra.mxu2 %v107_v41  ;;  %v197_v21 = vld [vmem:[#allocation5 + $0x378] sm:$0xff] }
  0x2c   :  { %v166_v46 = vld [vmem:[#allocation5 + $0x280] sm:$0xff]  ;;  %v167_v47 = vld [vmem:[#allocation5 + $0x288] sm:$0xff]  ;;  %257 = vmatpush.msra.mxu1 %v170_v42  ;;  %303 = vmatpush.msra.mxu3 %v171_v43  ;;  %v124_v22 = vld [vmem:[#allocation5 + $0x130] sm:$0xff] }
  0x2d   :  { %v98_v48 = vld [vmem:[#allocation5 + $0x60] sm:$0xff]  ;;  %v99_v49 = vld [vmem:[#allocation5 + $0x68] sm:$0xff]  ;;  %235 = vmatpush.msra.mxu0 %v102_v44  ;;  %281 = vmatpush.msra.mxu2 %v103_v45  ;;  %v192_v23 = vld [vmem:[#allocation5 + $0x350] sm:$0xff] }
  0x2e   :  { %v162_v50 = vld [vmem:[#allocation5 + $0x260] sm:$0xff]  ;;  %v163_v51 = vld [vmem:[#allocation5 + $0x268] sm:$0xff]  ;;  %258 = vmatpush.msra.mxu1 %v166_v46  ;;  %304 = vmatpush.msra.mxu3 %v167_v47  ;;  %v125_v24 = vld [vmem:[#allocation5 + $0x138] sm:$0xff] }
  0x2f   :  { %v94_v52 = vld [vmem:[#allocation5 + $0x40] sm:$0xff]  ;;  %v95_v53 = vld [vmem:[#allocation5 + $0x48] sm:$0xff]  ;;  %236 = vmatpush.msra.mxu0 %v98_v48  ;;  %282 = vmatpush.msra.mxu2 %v99_v49  ;;  %v193_v25 = vld [vmem:[#allocation5 + $0x358] sm:$0xff] }
  0x30   :  { %v158_v54 = vld [vmem:[#allocation5 + $0x240] sm:$0xff]  ;;  %v159_v55 = vld [vmem:[#allocation5 + $0x248] sm:$0xff]  ;;  %259 = vmatpush.msra.mxu1 %v162_v50  ;;  %305 = vmatpush.msra.mxu3 %v163_v51  ;;  %v120_v26 = vld [vmem:[#allocation5 + $0x110] sm:$0xff] }
  0x31   :  { %v90_v56 = vld [vmem:[#allocation5 + $0x20] sm:$0xff]  ;;  %v91_v57 = vld [vmem:[#allocation5 + $0x28] sm:$0xff]  ;;  %237 = vmatpush.msra.mxu0 %v94_v52  ;;  %283 = vmatpush.msra.mxu2 %v95_v53  ;;  %v188_v27 = vld [vmem:[#allocation5 + $0x330] sm:$0xff] }
  0x32   :  { %v154_v58 = vld [vmem:[#allocation5 + $0x220] sm:$0xff]  ;;  %v155_v59 = vld [vmem:[#allocation5 + $0x228] sm:$0xff]  ;;  %260 = vmatpush.msra.mxu1 %v158_v54  ;;  %306 = vmatpush.msra.mxu3 %v159_v55  ;;  %v121_v28 = vld [vmem:[#allocation5 + $0x118] sm:$0xff] }
  0x33   :  { %v86_v60 = vld [vmem:[#allocation5] sm:$0xff]  ;;  %v87_v61 = vld [vmem:[#allocation5 + $0x8] sm:$0xff]  ;;  %238 = vmatpush.msra.mxu0 %v90_v56  ;;  %284 = vmatpush.msra.mxu2 %v91_v57  ;;  %v189_v29 = vld [vmem:[#allocation5 + $0x338] sm:$0xff] }
  0x34   :  { %261 = vmatpush.msra.mxu1 %v154_v58  ;;  %307 = vmatpush.msra.mxu3 %v155_v59  ;;  %v150_v0 = vld [vmem:[#allocation5 + $0x200] sm:$0xff]  ;;  %v151_v1 = vld [vmem:[#allocation5 + $0x208] sm:$0xff]  ;;  %v116_v31 = vld [vmem:[#allocation5 + $0xf0] sm:$0xff] }
  0x35   :  { %239 = vmatpush.msra.mxu0 %v86_v60  ;;  %285 = vmatpush.msra.mxu2 %v87_v61  ;;  %v795_v30 = vld [vmem:[#allocation2] sm:$0xff]  ;;  %v184_v32 = vld [vmem:[#allocation5 + $0x310] sm:$0xff]  ;;  %v117_v33 = vld [vmem:[#allocation5 + $0xf8] sm:$0xff] }
  0x36   :  { %262 = vmatpush.msra.mxu1 %v150_v0  ;;  %308 = vmatpush.msra.mxu3 %v151_v1  ;;  %v185_v34 = vld [vmem:[#allocation5 + $0x318] sm:$0xff]  ;;  %v799_v35 = vld [vmem:[#allocation2 + $0x8] sm:$0xff]  ;;  %v112_v36 = vld [vmem:[#allocation5 + $0xd0] sm:$0xff] }
  0x37   :  { %316 = vmatpush.msrb.mxu0 %v148_v62  ;;  %362 = vmatpush.msrb.mxu2 %v149_v63  ;;  %v180_v37 = vld [vmem:[#allocation5 + $0x2f0] sm:$0xff]  ;;  %v113_v38 = vld [vmem:[#allocation5 + $0xd8] sm:$0xff] }
  0x38   :  { %339 = vmatpush.msrb.mxu1 %v212_v3  ;;  %385 = vmatpush.msrb.mxu3 %v213_v5  ;;  %v181_v39 = vld [vmem:[#allocation5 + $0x2f8] sm:$0xff]  ;;  %v108_v40 = vld [vmem:[#allocation5 + $0xb0] sm:$0xff] }
  0x39   :  { %317 = vmatpush.msrb.mxu0 %v144_v2  ;;  %363 = vmatpush.msrb.mxu2 %v145_v4  ;;  %v176_v41 = vld [vmem:[#allocation5 + $0x2d0] sm:$0xff]  ;;  %v109_v42 = vld [vmem:[#allocation5 + $0xb8] sm:$0xff] }
  0x3a   :  { %340 = vmatpush.msrb.mxu1 %v208_v7  ;;  %386 = vmatpush.msrb.mxu3 %v209_v9  ;;  %v177_v43 = vld [vmem:[#allocation5 + $0x2d8] sm:$0xff]  ;;  %v104_v44 = vld [vmem:[#allocation5 + $0x90] sm:$0xff] }
  0x3b   :  { %318 = vmatpush.msrb.mxu0 %v140_v6  ;;  %364 = vmatpush.msrb.mxu2 %v141_v8  ;;  %v172_v45 = vld [vmem:[#allocation5 + $0x2b0] sm:$0xff]  ;;  %v105_v46 = vld [vmem:[#allocation5 + $0x98] sm:$0xff] }
  0x3c   :  { %341 = vmatpush.msrb.mxu1 %v204_v11  ;;  %387 = vmatpush.msrb.mxu3 %v205_v13  ;;  %v173_v47 = vld [vmem:[#allocation5 + $0x2b8] sm:$0xff]  ;;  %v803_v48 = vld [vmem:[#allocation2 + $0x10] sm:$0xff]  ;;  %v428_v13 = vld [vmem:[#allocation8 + $0x60] sm:$0xff] }
  0x3d   :  { %319 = vmatpush.msrb.mxu0 %v136_v10  ;;  %365 = vmatpush.msrb.mxu2 %v137_v12  ;;  %v100_v49 = vld [vmem:[#allocation5 + $0x70] sm:$0xff]  ;;  %v101_v51 = vld [vmem:[#allocation5 + $0x78] sm:$0xff] }
  0x3e   :  { %342 = vmatpush.msrb.mxu1 %v200_v15  ;;  %388 = vmatpush.msrb.mxu3 %v201_v17  ;;  %v168_v50 = vld [vmem:[#allocation5 + $0x290] sm:$0xff]  ;;  %v169_v52 = vld [vmem:[#allocation5 + $0x298] sm:$0xff] }
  0x3f   :  { %320 = vmatpush.msrb.mxu0 %v132_v14  ;;  %366 = vmatpush.msrb.mxu2 %v133_v16  ;;  %v807_v53 = vld [vmem:[#allocation2 + $0x18] sm:$0xff]  ;;  %v96_v54 = vld [vmem:[#allocation5 + $0x50] sm:$0xff]  ;;  %v444_v14 = vld [vmem:[#allocation8 + $0xe0] sm:$0xff] }
  0x40   :  { %343 = vmatpush.msrb.mxu1 %v196_v19  ;;  %389 = vmatpush.msrb.mxu3 %v197_v21  ;;  %v164_v55 = vld [vmem:[#allocation5 + $0x270] sm:$0xff]  ;;  %v97_v56 = vld [vmem:[#allocation5 + $0x58] sm:$0xff] }
  0x41   :  { %321 = vmatpush.msrb.mxu0 %v128_v18  ;;  %367 = vmatpush.msrb.mxu2 %v129_v20  ;;  %v165_v57 = vld [vmem:[#allocation5 + $0x278] sm:$0xff]  ;;  %v92_v58 = vld [vmem:[#allocation5 + $0x30] sm:$0xff]  ;;  %v460_v20 = vld [vmem:[#allocation8 + $0x160] sm:$0xff] }
  0x42   :  { %344 = vmatpush.msrb.mxu1 %v192_v23  ;;  %390 = vmatpush.msrb.mxu3 %v193_v25  ;;  %v160_v59 = vld [vmem:[#allocation5 + $0x250] sm:$0xff]  ;;  %v93_v60 = vld [vmem:[#allocation5 + $0x38] sm:$0xff]  ;;  %v424_v23 = vld [vmem:[#allocation8 + $0x40] sm:$0xff] }
  0x43   :  { %322 = vmatpush.msrb.mxu0 %v124_v22  ;;  %368 = vmatpush.msrb.mxu2 %v125_v24  ;;  %v161_v61 = vld [vmem:[#allocation5 + $0x258] sm:$0xff]  ;;  %v88_v62 = vld [vmem:[#allocation5 + $0x10] sm:$0xff]  ;;  %v440_v24 = vld [vmem:[#allocation8 + $0xc0] sm:$0xff] }
  0x44   :  { %345 = vmatpush.msrb.mxu1 %v188_v27  ;;  %391 = vmatpush.msrb.mxu3 %v189_v29  ;;  %v156_v63 = vld [vmem:[#allocation5 + $0x230] sm:$0xff]  ;;  %v89_v0 = vld [vmem:[#allocation5 + $0x18] sm:$0xff] }
  0x45   :  { %323 = vmatpush.msrb.mxu0 %v120_v26  ;;  %369 = vmatpush.msrb.mxu2 %v121_v28  ;;  %v157_v1 = vld [vmem:[#allocation5 + $0x238] sm:$0xff]  ;;  %v152_v2 = vld [vmem:[#allocation5 + $0x210] sm:$0xff] }
  0x46   :  { %240 = vmatmul.f32.vlgmr.msra.gmra.mxu0 %v795_v30  ;;  %286 = vmatmul.f32.vlgmr.msra.gmra.mxu2 %v795_v30  ;;  %v153_v3 = vld [vmem:[#allocation5 + $0x218] sm:$0xff]  ;;  %v429_v11 = vld [vmem:[#allocation8 + $0x68] sm:$0xff] }
  0x47   :  { %324 = vmatpush.msrb.mxu0 %v116_v31  ;;  %346 = vmatpush.msrb.mxu1 %v184_v32  ;;  %v431_v4 = vld [vmem:[#allocation8 + $0x78] sm:$0xff]  ;;  %v430_v8 = vld [vmem:[#allocation8 + $0x70] sm:$0xff]  ;;  %v445_v12 = vld [vmem:[#allocation8 + $0xe8] sm:$0xff] }
  0x48   :  { %370 = vmatpush.msrb.mxu2 %v117_v33  ;;  %392 = vmatpush.msrb.mxu3 %v185_v34  ;;  %v447_v5 = vld [vmem:[#allocation8 + $0xf8] sm:$0xff]  ;;  %v446_v9 = vld [vmem:[#allocation8 + $0xf0] sm:$0xff]  ;;  %v461_v17 = vld [vmem:[#allocation8 + $0x168] sm:$0xff] }
  0x49   :  { %263 = vmatmul.f32.vlgmr.msra.gmra.mxu1 %v799_v35  ;;  %309 = vmatmul.f32.vlgmr.msra.gmra.mxu3 %v799_v35  ;;  %v463_v6 = vld [vmem:[#allocation8 + $0x178] sm:$0xff]  ;;  %v462_v10 = vld [vmem:[#allocation8 + $0x170] sm:$0xff]  ;;  %v425_v21 = vld [vmem:[#allocation8 + $0x48] sm:$0xff] }
  0x4a   :  { %325 = vmatpush.msrb.mxu0 %v112_v36  ;;  %347 = vmatpush.msrb.mxu1 %v180_v37  ;;  %v479_v7 = vld [vmem:[#allocation8 + $0x1f8] sm:$0xff]  ;;  %v426_v18 = vld [vmem:[#allocation8 + $0x50] sm:$0xff]  ;;  %v441_v22 = vld [vmem:[#allocation8 + $0xc8] sm:$0xff] }
  0x4b   :  { %371 = vmatpush.msrb.mxu2 %v113_v38  ;;  %393 = vmatpush.msrb.mxu3 %v181_v39  ;;  %v427_v15 = vld [vmem:[#allocation8 + $0x58] sm:$0xff]  ;;  %v442_v19 = vld [vmem:[#allocation8 + $0xd0] sm:$0xff]  ;;  %v421_v28 = vld [vmem:[#allocation8 + $0x28] sm:$0xff] }
  0x4c   :  { %326 = vmatpush.msrb.mxu0 %v108_v40  ;;  %348 = vmatpush.msrb.mxu1 %v176_v41  ;;  %v443_v16 = vld [vmem:[#allocation8 + $0xd8] sm:$0xff]  ;;  %v422_v27 = vld [vmem:[#allocation8 + $0x30] sm:$0xff]  ;;  %v420_v32 = vld [vmem:[#allocation8 + $0x20] sm:$0xff] }
  0x4d   :  { %372 = vmatpush.msrb.mxu2 %v109_v42  ;;  %394 = vmatpush.msrb.mxu3 %v177_v43  ;;  %v423_v25 = vld [vmem:[#allocation8 + $0x38] sm:$0xff]  ;;  %v438_v29 = vld [vmem:[#allocation8 + $0xb0] sm:$0xff]  ;;  %v437_v33 = vld [vmem:[#allocation8 + $0xa8] sm:$0xff] }
  0x4e   :  { %327 = vmatpush.msrb.mxu0 %v104_v44  ;;  %349 = vmatpush.msrb.mxu1 %v172_v45  ;;  %v439_v26 = vld [vmem:[#allocation8 + $0xb8] sm:$0xff]  ;;  %v478_v31 = vld [vmem:[#allocation8 + $0x1f0] sm:$0xff]  ;;  %v436_v37 = vld [vmem:[#allocation8 + $0xa0] sm:$0xff] }
  0x4f   :  { %373 = vmatpush.msrb.mxu2 %v105_v46  ;;  %395 = vmatpush.msrb.mxu3 %v173_v47  ;;  %v458_v34 = vld [vmem:[#allocation8 + $0x150] sm:$0xff]  ;;  %v419_v36 = vld [vmem:[#allocation8 + $0x18] sm:$0xff]  ;;  %v457_v38 = vld [vmem:[#allocation8 + $0x148] sm:$0xff] }
  0x50   :  { %243 = vmatmul.f32.gmra.mxu0 %v803_v48  ;;  %289 = vmatmul.f32.gmra.mxu2 %v803_v48  ;;  %v476_v39 = vld [vmem:[#allocation8 + $0x1e0] sm:$0xff]  ;;  %v418_v40 = vld [vmem:[#allocation8 + $0x10] sm:$0xff]  ;;  %v435_v41 = vld [vmem:[#allocation8 + $0x98] sm:$0xff] }
  0x51   :  { %328 = vmatpush.msrb.mxu0 %v100_v49  ;;  %350 = vmatpush.msrb.mxu1 %v168_v50  ;;  %v456_v42 = vld [vmem:[#allocation8 + $0x140] sm:$0xff]  ;;  %v475_v43 = vld [vmem:[#allocation8 + $0x1d8] sm:$0xff]  ;;  %v417_v44 = vld [vmem:[#allocation8 + $0x8] sm:$0xff] }
  0x52   :  { %374 = vmatpush.msrb.mxu2 %v101_v51  ;;  %396 = vmatpush.msrb.mxu3 %v169_v52  ;;  %v434_v45 = vld [vmem:[#allocation8 + $0x90] sm:$0xff]  ;;  %v455_v46 = vld [vmem:[#allocation8 + $0x138] sm:$0xff]  ;;  %v433_v49 = vld [vmem:[#allocation8 + $0x88] sm:$0xff] }
  0x53   :  { %266 = vmatmul.f32.gmra.mxu1 %v807_v53  ;;  %312 = vmatmul.f32.gmra.mxu3 %v807_v53  ;;  %v474_v47 = vld [vmem:[#allocation8 + $0x1d0] sm:$0xff]  ;;  %v473_v51 = vld [vmem:[#allocation8 + $0x1c8] sm:$0xff]  ;;  %v432_v52 = vld [vmem:[#allocation8 + $0x80] sm:$0xff] }
  0x54   :  { %329 = vmatpush.msrb.mxu0 %v96_v54  ;;  %351 = vmatpush.msrb.mxu1 %v164_v55  ;;  %v454_v50 = vld [vmem:[#allocation8 + $0x130] sm:$0xff]  ;;  %v472_v54 = vld [vmem:[#allocation8 + $0x1c0] sm:$0xff] }
  0x55   :  { %375 = vmatpush.msrb.mxu2 %v97_v56  ;;  %397 = vmatpush.msrb.mxu3 %v165_v57  ;;  %v452_v55 = vld [vmem:[#allocation8 + $0x120] sm:$0xff]  ;;  %v471_v56 = vld [vmem:[#allocation8 + $0x1b8] sm:$0xff] }
  0x56   :  { %330 = vmatpush.msrb.mxu0 %v92_v58  ;;  %352 = vmatpush.msrb.mxu1 %v160_v59  ;;  %v451_v57 = vld [vmem:[#allocation8 + $0x118] sm:$0xff]  ;;  %v470_v58 = vld [vmem:[#allocation8 + $0x1b0] sm:$0xff] }
  0x57   :  { %376 = vmatpush.msrb.mxu2 %v93_v60  ;;  %398 = vmatpush.msrb.mxu3 %v161_v61  ;;  %v450_v59 = vld [vmem:[#allocation8 + $0x110] sm:$0xff]  ;;  %v469_v60 = vld [vmem:[#allocation8 + $0x1a8] sm:$0xff] }
  0x58   :  { %331 = vmatpush.msrb.mxu0 %v88_v62  ;;  %353 = vmatpush.msrb.mxu1 %v156_v63  ;;  %v449_v61 = vld [vmem:[#allocation8 + $0x108] sm:$0xff]  ;;  %v468_v62 = vld [vmem:[#allocation8 + $0x1a0] sm:$0xff] }
  0x59   :  { %377 = vmatpush.msrb.mxu2 %v89_v0  ;;  %399 = vmatpush.msrb.mxu3 %v157_v1  ;;  %v448_v63 = vld [vmem:[#allocation8 + $0x100] sm:$0xff]  ;;  %v467_v0 = vld [vmem:[#allocation8 + $0x198] sm:$0xff] }
  0x5a   :  { %332 = vmatmul.f32.vlgmr.msrb.gmra.mxu0 %v795_v30  ;;  %378 = vmatmul.f32.vlgmr.msrb.gmra.mxu2 %v795_v30  ;;  %v459_v30 = vld [vmem:[#allocation8 + $0x158] sm:$0xff] }
  0x5b   :  { %354 = vmatpush.msrb.mxu1 %v152_v2  ;;  %400 = vmatpush.msrb.mxu3 %v153_v3  ;;  %v214_v1 = vld [vmem:[#allocation7] sm:$0xf]  ;;  %v466_v2 = vld [vmem:[#allocation8 + $0x190] sm:$0xff] }
  0x5c   :  { %355 = vmatmul.f32.vlgmr.msrb.gmra.mxu1 %v799_v35  ;;  %401 = vmatmul.f32.vlgmr.msrb.gmra.mxu3 %v799_v35  ;;  %v477_v35 = vld [vmem:[#allocation8 + $0x1e8] sm:$0xff]  ;;  %v216_v3 = vperm.slane %v214_v1, 0 }
  0x5d   :  { %484 = vmatpush.msra.mxu0 %v431_v4  ;;  %507 = vmatpush.msra.mxu1 %v447_v5  ;;  %v465_v4 = vld [vmem:[#allocation8 + $0x188] sm:$0xff]  ;;  %v464_v5 = vld [vmem:[#allocation8 + $0x180] sm:$0xff] }
  0x5e   :  { %530 = vmatpush.msra.mxu2 %v463_v6  ;;  %553 = vmatpush.msra.mxu3 %v479_v7 }
  0x5f   :  { %485 = vmatpush.msra.mxu0 %v430_v8  ;;  %508 = vmatpush.msra.mxu1 %v446_v9  ;;  %v217_v9 = vperm.slane %v214_v1, 1 }
  0x60   :  { %531 = vmatpush.msra.mxu2 %v462_v10  ;;  %554 = vmatpush.msra.mxu3 %v478_v31 }
  0x61   :  { %486 = vmatpush.msra.mxu0 %v429_v11  ;;  %509 = vmatpush.msra.mxu1 %v445_v12 }
  0x62   :  { %335 = vmatmul.f32.gmra.mxu0 %v803_v48  ;;  %381 = vmatmul.f32.gmra.mxu2 %v803_v48  ;;  %v416_v48 = vld [vmem:[#allocation8] sm:$0xff] }
  0x63   :  { %487 = vmatpush.msra.mxu0 %v428_v13  ;;  %510 = vmatpush.msra.mxu1 %v444_v14 }
  0x64   :  { %358 = vmatmul.f32.gmra.mxu1 %v807_v53  ;;  %404 = vmatmul.f32.gmra.mxu3 %v807_v53  ;;  %v453_v53 = vld [vmem:[#allocation8 + $0x128] sm:$0xff] }
  0x65   :  { %488 = vmatpush.msra.mxu0 %v427_v15  ;;  %511 = vmatpush.msra.mxu1 %v443_v16 }
  0x66   :  { %532 = vmatpush.msra.mxu2 %v461_v17  ;;  %555 = vmatpush.msra.mxu3 %v477_v35 }
  0x67   :  { %489 = vmatpush.msra.mxu0 %v426_v18  ;;  %512 = vmatpush.msra.mxu1 %v442_v19 }
  0x68   :  { %533 = vmatpush.msra.mxu2 %v460_v20  ;;  %556 = vmatpush.msra.mxu3 %v476_v39 }
  0x69   :  { %490 = vmatpush.msra.mxu0 %v425_v21  ;;  %513 = vmatpush.msra.mxu1 %v441_v22 }
  0x6a   :  { %534 = vmatpush.msra.mxu2 %v459_v30  ;;  %557 = vmatpush.msra.mxu3 %v475_v43 }
  0x6b   :  { %491 = vmatpush.msra.mxu0 %v424_v23  ;;  %514 = vmatpush.msra.mxu1 %v440_v24  ;;  %v218_v24 = vperm.slane %v214_v1, 2 }
  0x6c   :  { %535 = vmatpush.msra.mxu2 %v458_v34  ;;  %558 = vmatpush.msra.mxu3 %v474_v47 }
  0x6d   :  { %492 = vmatpush.msra.mxu0 %v423_v25  ;;  %515 = vmatpush.msra.mxu1 %v439_v26 }
  0x6e   :  { %536 = vmatpush.msra.mxu2 %v457_v38  ;;  %559 = vmatpush.msra.mxu3 %v473_v51 }
  0x6f   :  { %493 = vmatpush.msra.mxu0 %v422_v27  ;;  %516 = vmatpush.msra.mxu1 %v438_v29 }
  0x70   :  { %537 = vmatpush.msra.mxu2 %v456_v42  ;;  %560 = vmatpush.msra.mxu3 %v472_v54 }
  0x71   :  { %494 = vmatpush.msra.mxu0 %v421_v28  ;;  %517 = vmatpush.msra.mxu1 %v437_v33 }
  0x72   :  { %538 = vmatpush.msra.mxu2 %v455_v46  ;;  %561 = vmatpush.msra.mxu3 %v471_v56 }
  0x73   :  { %495 = vmatpush.msra.mxu0 %v420_v32  ;;  %518 = vmatpush.msra.mxu1 %v436_v37  ;;  %v219_v32 = vperm.slane %v214_v1, 3 }
  0x74   :  { %539 = vmatpush.msra.mxu2 %v454_v50  ;;  %562 = vmatpush.msra.mxu3 %v470_v58  ;;  %v610_v50 = vld [vmem:[%s832_s4] ss:$0 sm:$0xff] }
  0x75   :  { %496 = vmatpush.msra.mxu0 %v419_v36  ;;  %519 = vmatpush.msra.mxu1 %v435_v41 }
  0x76   :  { %540 = vmatpush.msra.mxu2 %v453_v53  ;;  %563 = vmatpush.msra.mxu3 %v469_v60 }
  0x77   :  { %497 = vmatpush.msra.mxu0 %v418_v40  ;;  %520 = vmatpush.msra.mxu1 %v434_v45 }
  0x78   :  { %541 = vmatpush.msra.mxu2 %v452_v55  ;;  %564 = vmatpush.msra.mxu3 %v468_v62 }
  0x79   :  { %498 = vmatpush.msra.mxu0 %v417_v44  ;;  %521 = vmatpush.msra.mxu1 %v433_v49 }
  0x7a   :  { %542 = vmatpush.msra.mxu2 %v451_v57  ;;  %565 = vmatpush.msra.mxu3 %v467_v0 }
  0x7b   :  { %499 = vmatpush.msra.mxu0 %v416_v48  ;;  %522 = vmatpush.msra.mxu1 %v432_v52 }
  0x7c   :  { %543 = vmatpush.msra.mxu2 %v450_v59  ;;  %566 = vmatpush.msra.mxu3 %v466_v2 }
  0x7e   :  { %544 = vmatpush.msra.mxu2 %v449_v61  ;;  %567 = vmatpush.msra.mxu3 %v465_v4 }
  0x80   :  { %545 = vmatpush.msra.mxu2 %v448_v63  ;;  %568 = vmatpush.msra.mxu3 %v464_v5 }
  0xc3   :  { %v241_v6 = vpop.f32.mrf.mxu0 }
  0xc4   :  { %v242_v7 = vadd.f32 %v241_v6, %v216_v3 }
  0xc6   :  { %v264_v8 = vpop.f32.mrf.mxu1 }
  0xc7   :  { %v265_v10 = vadd.f32 %v264_v8, %v242_v7 }
  0xc9   :  { %v408_v11 = vmax.f32 %v265_v10, 0.0  ;;  %v287_v12 = vpop.f32.mrf.mxu2 }
  0xca   :  { %v288_v13 = vadd.f32 %v287_v12, %v217_v9 }
  0xcb   :  { %500 = vmatmul.f32.vlgmr.msra.gmra.mxu0 %v408_v11 }
  0xcc   :  { %v310_v14 = vpop.f32.mrf.mxu3 }
  0xcd   :  { %v244_v15 = vpop.f32.mrf.mxu0  ;;  %v311_v16 = vadd.f32 %v310_v14, %v288_v13 }
  0xce   :  { %v245_v17 = vadd.f32 %v244_v15, %v216_v3 }
  0xcf   :  { %v409_v18 = vmax.f32 %v311_v16, 0.0 }
  0xd0   :  { %v267_v19 = vpop.f32.mrf.mxu1 }
  0xd1   :  { %v268_v20 = vadd.f32 %v267_v19, %v245_v17  ;;  %523 = vmatmul.f32.vlgmr.msra.gmra.mxu1 %v409_v18 }
  0xd3   :  { %v412_v21 = vmax.f32 %v268_v20, 0.0  ;;  %v290_v22 = vpop.f32.mrf.mxu2 }
  0xd4   :  { %v291_v23 = vadd.f32 %v290_v22, %v217_v9 }
  0xd5   :  { %503 = vmatmul.f32.gmra.mxu0 %v412_v21 }
  0xd6   :  { %v313_v25 = vpop.f32.mrf.mxu3 }
  0xd7   :  { %v314_v26 = vadd.f32 %v313_v25, %v291_v23  ;;  %v333_v27 = vpop.f32.mrf.mxu0 }
  0xd8   :  { %v334_v28 = vadd.f32 %v333_v27, %v218_v24 }
  0xd9   :  { %v413_v29 = vmax.f32 %v314_v26, 0.0  ;;  %v356_v30 = vpop.f32.mrf.mxu1 }
  0xda   :  { %v357_v31 = vadd.f32 %v356_v30, %v334_v28 }
  0xdb   :  { %526 = vmatmul.f32.gmra.mxu1 %v413_v29 }
  0xdc   :  { %v410_v33 = vmax.f32 %v357_v31, 0.0 }
  0xdd   :  { %v379_v34 = vpop.f32.mrf.mxu2 }
  0xde   :  { %v380_v35 = vadd.f32 %v379_v34, %v219_v32  ;;  %546 = vmatmul.f32.vlgmr.msra.gmra.mxu2 %v410_v33 }
  0xdf   :  { %v336_v36 = vpop.f32.mrf.mxu0  ;;  %v402_v37 = vpop.f32.mrf.mxu3 }
  0xe0   :  { %v337_v38 = vadd.f32 %v336_v36, %v218_v24  ;;  %v403_v39 = vadd.f32 %v402_v37, %v380_v35 }
  0xe1   :  { %v359_v40 = vpop.f32.mrf.mxu1 }
  0xe2   :  { %v411_v41 = vmax.f32 %v403_v39, 0.0  ;;  %v360_v42 = vadd.f32 %v359_v40, %v337_v38 }
  0xe4   :  { %v414_v43 = vmax.f32 %v360_v42, 0.0  ;;  %569 = vmatmul.f32.vlgmr.msra.gmra.mxu3 %v411_v41 }
  0xe5   :  { %v382_v44 = vpop.f32.mrf.mxu2 }
  0xe6   :  { %v383_v45 = vadd.f32 %v382_v44, %v219_v32  ;;  %549 = vmatmul.f32.gmra.mxu2 %v414_v43 }
  0xe7   :  { %v405_v46 = vpop.f32.mrf.mxu3 }
  0xe8   :  { %v406_v47 = vadd.f32 %v405_v46, %v383_v45 }
  0xea   :  { %v415_v48 = vmax.f32 %v406_v47, 0.0 }
  0xec   :  { %572 = vmatmul.f32.gmra.mxu3 %v415_v48 }
 0x148   :  { %v501_v49 = vpop.f32.mrf.mxu0 }
 0x149   :  { %v502_v52 = vadd.f32 %v610_v50, %v501_v49 }
 0x14e   :  { %v524_v51 = vpop.f32.mrf.mxu1 }
 0x14f   :  { %v525_v54 = vadd.f32 %v524_v51, %v502_v52 }
 0x152   :  { %v504_v55 = vpop.f32.mrf.mxu0 }
 0x153   :  { %v505_v58 = vadd.f32 %v610_v50, %v504_v55 }
 0x158   :  { %v527_v60 = vpop.f32.mrf.mxu1 }
 0x159   :  { %v528_v62 = vadd.f32 %v527_v60, %v505_v58 }
 0x161   :  { %v547_v53 = vpop.f32.mrf.mxu2 }
 0x162   :  { %v548_v56 = vadd.f32 %v547_v53, %v525_v54 }
 0x167   :  { %v570_v57 = vpop.f32.mrf.mxu3 }
 0x168   :  { %v571_v59 = vadd.f32 %v570_v57, %v548_v56 }
 0x169   :  { %v550_v61 = vpop.f32.mrf.mxu2 }
 0x16a   :  { %576 = vst [vmem:[#allocation10] sm:$0xff] %v571_v59  ;;  %v551_v63 = vadd.f32 %v550_v61, %v528_v62 }
 0x16f   :  { %v573_v0 = vpop.f32.mrf.mxu3 }
 0x170   :  { %v574_v1 = vadd.f32 %v573_v0, %v551_v63 }
 0x172   :  { %577 = vst [vmem:[#allocation10 + $0x8] sm:$0xff] %v574_v1 }
 0x173   :  { %590 = dma.vmem_to_hbm [thread:$0]  %s583_s18, 256, %s585_s21, [#allocation4], %s747_s15, %s747_s15, %s748_s16  }
 0x174   :  { %737 = dma.done.wait [#allocation4], 256  }
 0x175   :  { %738 = vsyncadd [#allocation4], 4294967040 }
 0x176   :  { %595 = vsyncpa [#allocation3], 1 }
 0x177   :  { %596 = vsyncpa [#allocation6], 1 }
 0x178   :  { %597 = vsyncpa [#allocation9], 1 }
 0x179   :  { %598 = vsyncpa [#allocation4], 1 }

// kernel: tpu_custom_call.1
= control target key start
LH: loop header
LB: loop body
LE: loop exit
PB: predicated region body
PF: predicated region fallthrough
CT: control target
= control target key end

     0   :  { %10 = vsyncpa [#allocation3], 0  ;;  %s828_s0 = inlined_call_operand.hbm [shape: f32[16,256], index: 0, kind: input, shape index: {}]   ;;  %s829_s1 = inlined_call_operand.hbm [shape: f32[256,512], index: 1, kind: input, shape index: {}]   ;;  %s830_s2 = inlined_call_operand.hbm [shape: f32[1,512], index: 2, kind: input, shape index: {}]   ;;  %s831_s3 = inlined_call_operand.hbm [shape: f32[512,128], index: 3, kind: input, shape index: {}]   ;;  %s832_s4 = inlined_call_operand.vmem [shape: f32[1,128], index: 4, kind: input, shape index: {}]   ;;  %s833_s5 = inlined_call_operand.hbm [shape: f32[16,128], index: 5, kind: output, shape index: {}]  }
   0x1   :  { %11 = vsyncpa [#allocation6], 0 }
   0x2   :  { %12 = vsyncpa [#allocation9], 0  ;;  %s31_s20 = sshll.u32 %s829_s1, 4  ;;  %s32_s20 = int_to_ptr.hbm [resolvable:$true] %s31_s20 }
   0x3   :  { %13 = vsyncpa [#allocation4], 0  ;;  %s739_s21 = smov [#allocation5]   ;;  %s18_s25 = sshll.u32 %s828_s0, 4  ;;  %s19_s25 = int_to_ptr.hbm [resolvable:$true] %s18_s25 }
   0x4   :  { %s33_s22 = sshll.u32 %s739_s21, 4  ;;  %s740_s26 = smov 512   ;;  %s34_s22 = int_to_ptr.vmem [resolvable:$true] %s33_s22 }
   0x5   :  { %s741_s27 = smov 32   ;;  %s742_s28 = smov [#allocation2]  }
   0x6   :  { %39 = dma.hbm_to_vmem [thread:$0]  %s32_s20, 16384, %s34_s22, [#allocation6], %s740_s26, %s740_s26, %s741_s27  }
   0x7   :  { %s20_s29 = sshll.u32 %s742_s28, 4  ;;  %s743_s30 = smov 256   ;;  %s21_s29 = int_to_ptr.vmem [resolvable:$true] %s20_s29 }
   0x8   :  { %s744_s6 = smov 16   ;;  %s45_s8 = sshll.u32 %s830_s2, 4  ;;  %s46_s8 = int_to_ptr.hbm [resolvable:$true] %s45_s8 }
   0x9   :  { %26 = dma.hbm_to_vmem [thread:$0]  %s19_s25, 512, %s21_s29, [#allocation3], %s743_s30, %s743_s30, %s744_s6  }
   0xa   :  { %s745_s9 = smov [#allocation7]   ;;  %s55_s12 = sshll.u32 %s831_s3, 4  ;;  %s56_s12 = int_to_ptr.hbm [resolvable:$true] %s55_s12 }
   0xb   :  { %s47_s10 = sshll.u32 %s745_s9, 4  ;;  %s746_s13 = smov [#allocation8]   ;;  %s48_s10 = int_to_ptr.vmem [resolvable:$true] %s47_s10 }
   0xc   :  { %50 = dma.hbm_to_vmem [thread:$0]  %s46_s8, 64, %s48_s10, [#allocation6]  }
   0xd   :  { %s57_s14 = sshll.u32 %s746_s13, 4  ;;  %s747_s15 = smov 128   ;;  %s58_s14 = int_to_ptr.vmem [resolvable:$true] %s57_s14 }
   0xe   :  { %s748_s16 = smov 8  }
   0xf   :  { %63 = dma.hbm_to_vmem [thread:$0]  %s56_s12, 8192, %s58_s14, [#allocation9], %s747_s15, %s747_s15, %s748_s16  }
  0x10   :  { %731 = dma.done.wait [#allocation3], 512  }
  0x11   :  { %732 = vsyncadd [#allocation3], 4294966784 }
  0x12   :  { %733 = dma.done.wait [#allocation6], 16448  }
  0x13   :  { %734 = vsyncadd [#allocation6], 4294950848 }
  0x14   :  { %735 = dma.done.wait [#allocation9], 8192  }
  0x15   :  { %736 = vsyncadd [#allocation9], 4294959104  ;;  %v146_v0 = vld [vmem:[#allocation5 + $0x1e0] sm:$0xff]  ;;  %v147_v1 = vld [vmem:[#allocation5 + $0x1e8] sm:$0xff]  ;;  %s749_s17 = smov [#allocation10]   ;;  %s584_s21 = sshll.u32 %s833_s5, 4  ;;  %s585_s21 = int_to_ptr.hbm [resolvable:$true] %s584_s21 }
  0x16   :  { %v142_v2 = vld [vmem:[#allocation5 + $0x1c0] sm:$0xff]  ;;  %224 = vmatpush.msra.mxu0 %v146_v0  ;;  %270 = vmatpush.msra.mxu2 %v147_v1  ;;  %v143_v4 = vld [vmem:[#allocation5 + $0x1c8] sm:$0xff]  ;;  %v148_v62 = vld [vmem:[#allocation5 + $0x1f0] sm:$0xff]  ;;  %s582_s18 = sshll.u32 %s749_s17, 4  ;;  %s583_s18 = int_to_ptr.vmem [resolvable:$true] %s582_s18 }
  0x17   :  { %v210_v3 = vld [vmem:[#allocation5 + $0x3e0] sm:$0xff]  ;;  %v211_v5 = vld [vmem:[#allocation5 + $0x3e8] sm:$0xff]  ;;  %v149_v63 = vld [vmem:[#allocation5 + $0x1f8] sm:$0xff] }
  0x18   :  { %247 = vmatpush.msra.mxu1 %v210_v3  ;;  %293 = vmatpush.msra.mxu3 %v211_v5  ;;  %v138_v6 = vld [vmem:[#allocation5 + $0x1a0] sm:$0xff]  ;;  %v139_v8 = vld [vmem:[#allocation5 + $0x1a8] sm:$0xff]  ;;  %v212_v3 = vld [vmem:[#allocation5 + $0x3f0] sm:$0xff] }
  0x19   :  { %v206_v7 = vld [vmem:[#allocation5 + $0x3c0] sm:$0xff]  ;;  %225 = vmatpush.msra.mxu0 %v142_v2  ;;  %271 = vmatpush.msra.mxu2 %v143_v4  ;;  %v207_v9 = vld [vmem:[#allocation5 + $0x3c8] sm:$0xff]  ;;  %v144_v2 = vld [vmem:[#allocation5 + $0x1d0] sm:$0xff] }
  0x1a   :  { %v202_v10 = vld [vmem:[#allocation5 + $0x3a0] sm:$0xff]  ;;  %248 = vmatpush.msra.mxu1 %v206_v7  ;;  %294 = vmatpush.msra.mxu3 %v207_v9  ;;  %v135_v12 = vld [vmem:[#allocation5 + $0x188] sm:$0xff]  ;;  %v145_v4 = vld [vmem:[#allocation5 + $0x1d8] sm:$0xff] }
  0x1b   :  { %v134_v11 = vld [vmem:[#allocation5 + $0x180] sm:$0xff]  ;;  %v203_v13 = vld [vmem:[#allocation5 + $0x3a8] sm:$0xff]  ;;  %226 = vmatpush.msra.mxu0 %v138_v6  ;;  %272 = vmatpush.msra.mxu2 %v139_v8  ;;  %v213_v5 = vld [vmem:[#allocation5 + $0x3f8] sm:$0xff] }
  0x1c   :  { %v198_v14 = vld [vmem:[#allocation5 + $0x380] sm:$0xff]  ;;  %v199_v15 = vld [vmem:[#allocation5 + $0x388] sm:$0xff]  ;;  %249 = vmatpush.msra.mxu1 %v202_v10  ;;  %295 = vmatpush.msra.mxu3 %v203_v13  ;;  %v140_v6 = vld [vmem:[#allocation5 + $0x1b0] sm:$0xff] }
  0x1d   :  { %v130_v16 = vld [vmem:[#allocation5 + $0x160] sm:$0xff]  ;;  %v131_v17 = vld [vmem:[#allocation5 + $0x168] sm:$0xff]  ;;  %227 = vmatpush.msra.mxu0 %v134_v11  ;;  %273 = vmatpush.msra.mxu2 %v135_v12  ;;  %v208_v7 = vld [vmem:[#allocation5 + $0x3d0] sm:$0xff] }
  0x1e   :  { %v194_v18 = vld [vmem:[#allocation5 + $0x360] sm:$0xff]  ;;  %v195_v19 = vld [vmem:[#allocation5 + $0x368] sm:$0xff]  ;;  %250 = vmatpush.msra.mxu1 %v198_v14  ;;  %296 = vmatpush.msra.mxu3 %v199_v15  ;;  %v141_v8 = vld [vmem:[#allocation5 + $0x1b8] sm:$0xff] }
  0x1f   :  { %v126_v20 = vld [vmem:[#allocation5 + $0x140] sm:$0xff]  ;;  %v127_v21 = vld [vmem:[#allocation5 + $0x148] sm:$0xff]  ;;  %228 = vmatpush.msra.mxu0 %v130_v16  ;;  %274 = vmatpush.msra.mxu2 %v131_v17  ;;  %v209_v9 = vld [vmem:[#allocation5 + $0x3d8] sm:$0xff] }
  0x20   :  { %v190_v22 = vld [vmem:[#allocation5 + $0x340] sm:$0xff]  ;;  %v191_v23 = vld [vmem:[#allocation5 + $0x348] sm:$0xff]  ;;  %251 = vmatpush.msra.mxu1 %v194_v18  ;;  %297 = vmatpush.msra.mxu3 %v195_v19  ;;  %v136_v10 = vld [vmem:[#allocation5 + $0x190] sm:$0xff] }
  0x21   :  { %v122_v24 = vld [vmem:[#allocation5 + $0x120] sm:$0xff]  ;;  %v123_v25 = vld [vmem:[#allocation5 + $0x128] sm:$0xff]  ;;  %229 = vmatpush.msra.mxu0 %v126_v20  ;;  %275 = vmatpush.msra.mxu2 %v127_v21  ;;  %v204_v11 = vld [vmem:[#allocation5 + $0x3b0] sm:$0xff] }
  0x22   :  { %v186_v26 = vld [vmem:[#allocation5 + $0x320] sm:$0xff]  ;;  %v187_v27 = vld [vmem:[#allocation5 + $0x328] sm:$0xff]  ;;  %252 = vmatpush.msra.mxu1 %v190_v22  ;;  %298 = vmatpush.msra.mxu3 %v191_v23  ;;  %v137_v12 = vld [vmem:[#allocation5 + $0x198] sm:$0xff] }
  0x23   :  { %v118_v28 = vld [vmem:[#allocation5 + $0x100] sm:$0xff]  ;;  %v119_v29 = vld [vmem:[#allocation5 + $0x108] sm:$0xff]  ;;  %230 = vmatpush.msra.mxu0 %v122_v24  ;;  %276 = vmatpush.msra.mxu2 %v123_v25  ;;  %v205_v13 = vld [vmem:[#allocation5 + $0x3b8] sm:$0xff] }
  0x24   :  { %v182_v30 = vld [vmem:[#allocation5 + $0x300] sm:$0xff]  ;;  %v183_v31 = vld [vmem:[#allocation5 + $0x308] sm:$0xff]  ;;  %253 = vmatpush.msra.mxu1 %v186_v26  ;;  %299 = vmatpush.msra.mxu3 %v187_v27  ;;  %v132_v14 = vld [vmem:[#allocation5 + $0x170] sm:$0xff] }
  0x25   :  { %v114_v32 = vld [vmem:[#allocation5 + $0xe0] sm:$0xff]  ;;  %v115_v33 = vld [vmem:[#allocation5 + $0xe8] sm:$0xff]  ;;  %231 = vmatpush.msra.mxu0 %v118_v28  ;;  %277 = vmatpush.msra.mxu2 %v119_v29  ;;  %v200_v15 = vld [vmem:[#allocation5 + $0x390] sm:$0xff] }
  0x26   :  { %v178_v34 = vld [vmem:[#allocation5 + $0x2e0] sm:$0xff]  ;;  %v179_v35 = vld [vmem:[#allocation5 + $0x2e8] sm:$0xff]  ;;  %254 = vmatpush.msra.mxu1 %v182_v30  ;;  %300 = vmatpush.msra.mxu3 %v183_v31  ;;  %v133_v16 = vld [vmem:[#allocation5 + $0x178] sm:$0xff] }
  0x27   :  { %v110_v36 = vld [vmem:[#allocation5 + $0xc0] sm:$0xff]  ;;  %v111_v37 = vld [vmem:[#allocation5 + $0xc8] sm:$0xff]  ;;  %232 = vmatpush.msra.mxu0 %v114_v32  ;;  %278 = vmatpush.msra.mxu2 %v115_v33  ;;  %v201_v17 = vld [vmem:[#allocation5 + $0x398] sm:$0xff] }
  0x28   :  { %v174_v38 = vld [vmem:[#allocation5 + $0x2c0] sm:$0xff]  ;;  %v175_v39 = vld [vmem:[#allocation5 + $0x2c8] sm:$0xff]  ;;  %255 = vmatpush.msra.mxu1 %v178_v34  ;;  %301 = vmatpush.msra.mxu3 %v179_v35  ;;  %v128_v18 = vld [vmem:[#allocation5 + $0x150] sm:$0xff] }
  0x29   :  { %v106_v40 = vld [vmem:[#allocation5 + $0xa0] sm:$0xff]  ;;  %v107_v41 = vld [vmem:[#allocation5 + $0xa8] sm:$0xff]  ;;  %233 = vmatpush.msra.mxu0 %v110_v36  ;;  %279 = vmatpush.msra.mxu2 %v111_v37  ;;  %v196_v19 = vld [vmem:[#allocation5 + $0x370] sm:$0xff] }
  0x2a   :  { %v170_v42 = vld [vmem:[#allocation5 + $0x2a0] sm:$0xff]  ;;  %v171_v43 = vld [vmem:[#allocation5 + $0x2a8] sm:$0xff]  ;;  %256 = vmatpush.msra.mxu1 %v174_v38  ;;  %302 = vmatpush.msra.mxu3 %v175_v39  ;;  %v129_v20 = vld [vmem:[#allocation5 + $0x158] sm:$0xff] }
  0x2b   :  { %v102_v44 = vld [vmem:[#allocation5 + $0x80] sm:$0xff]  ;;  %v103_v45 = vld [vmem:[#allocation5 + $0x88] sm:$0xff]  ;;  %234 = vmatpush.msra.mxu0 %v106_v40  ;;  %280 = vmatpush.msra.mxu2 %v107_v41  ;;  %v197_v21 = vld [vmem:[#allocation5 + $0x378] sm:$0xff] }
  0x2c   :  { %v166_v46 = vld [vmem:[#allocation5 + $0x280] sm:$0xff]  ;;  %v167_v47 = vld [vmem:[#allocation5 + $0x288] sm:$0xff]  ;;  %257 = vmatpush.msra.mxu1 %v170_v42  ;;  %303 = vmatpush.msra.mxu3 %v171_v43  ;;  %v124_v22 = vld [vmem:[#allocation5 + $0x130] sm:$0xff] }
  0x2d   :  { %v98_v48 = vld [vmem:[#allocation5 + $0x60] sm:$0xff]  ;;  %v99_v49 = vld [vmem:[#allocation5 + $0x68] sm:$0xff]  ;;  %235 = vmatpush.msra.mxu0 %v102_v44  ;;  %281 = vmatpush.msra.mxu2 %v103_v45  ;;  %v192_v23 = vld [vmem:[#allocation5 + $0x350] sm:$0xff] }
  0x2e   :  { %v162_v50 = vld [vmem:[#allocation5 + $0x260] sm:$0xff]  ;;  %v163_v51 = vld [vmem:[#allocation5 + $0x268] sm:$0xff]  ;;  %258 = vmatpush.msra.mxu1 %v166_v46  ;;  %304 = vmatpush.msra.mxu3 %v167_v47  ;;  %v125_v24 = vld [vmem:[#allocation5 + $0x138] sm:$0xff] }
  0x2f   :  { %v94_v52 = vld [vmem:[#allocation5 + $0x40] sm:$0xff]  ;;  %v95_v53 = vld [vmem:[#allocation5 + $0x48] sm:$0xff]  ;;  %236 = vmatpush.msra.mxu0 %v98_v48  ;;  %282 = vmatpush.msra.mxu2 %v99_v49  ;;  %v193_v25 = vld [vmem:[#allocation5 + $0x358] sm:$0xff] }
  0x30   :  { %v158_v54 = vld [vmem:[#allocation5 + $0x240] sm:$0xff]  ;;  %v159_v55 = vld [vmem:[#allocation5 + $0x248] sm:$0xff]  ;;  %259 = vmatpush.msra.mxu1 %v162_v50  ;;  %305 = vmatpush.msra.mxu3 %v163_v51  ;;  %v120_v26 = vld [vmem:[#allocation5 + $0x110] sm:$0xff] }
  0x31   :  { %v90_v56 = vld [vmem:[#allocation5 + $0x20] sm:$0xff]  ;;  %v91_v57 = vld [vmem:[#allocation5 + $0x28] sm:$0xff]  ;;  %237 = vmatpush.msra.mxu0 %v94_v52  ;;  %283 = vmatpush.msra.mxu2 %v95_v53  ;;  %v188_v27 = vld [vmem:[#allocation5 + $0x330] sm:$0xff] }
  0x32   :  { %v154_v58 = vld [vmem:[#allocation5 + $0x220] sm:$0xff]  ;;  %v155_v59 = vld [vmem:[#allocation5 + $0x228] sm:$0xff]  ;;  %260 = vmatpush.msra.mxu1 %v158_v54  ;;  %306 = vmatpush.msra.mxu3 %v159_v55  ;;  %v121_v28 = vld [vmem:[#allocation5 + $0x118] sm:$0xff] }
  0x33   :  { %v86_v60 = vld [vmem:[#allocation5] sm:$0xff]  ;;  %v87_v61 = vld [vmem:[#allocation5 + $0x8] sm:$0xff]  ;;  %238 = vmatpush.msra.mxu0 %v90_v56  ;;  %284 = vmatpush.msra.mxu2 %v91_v57  ;;  %v189_v29 = vld [vmem:[#allocation5 + $0x338] sm:$0xff] }
  0x34   :  { %261 = vmatpush.msra.mxu1 %v154_v58  ;;  %307 = vmatpush.msra.mxu3 %v155_v59  ;;  %v150_v0 = vld [vmem:[#allocation5 + $0x200] sm:$0xff]  ;;  %v151_v1 = vld [vmem:[#allocation5 + $0x208] sm:$0xff]  ;;  %v116_v31 = vld [vmem:[#allocation5 + $0xf0] sm:$0xff] }
  0x35   :  { %239 = vmatpush.msra.mxu0 %v86_v60  ;;  %285 = vmatpush.msra.mxu2 %v87_v61  ;;  %v795_v30 = vld [vmem:[#allocation2] sm:$0xff]  ;;  %v184_v32 = vld [vmem:[#allocation5 + $0x310] sm:$0xff]  ;;  %v117_v33 = vld [vmem:[#allocation5 + $0xf8] sm:$0xff] }
  0x36   :  { %262 = vmatpush.msra.mxu1 %v150_v0  ;;  %308 = vmatpush.msra.mxu3 %v151_v1  ;;  %v185_v34 = vld [vmem:[#allocation5 + $0x318] sm:$0xff]  ;;  %v799_v35 = vld [vmem:[#allocation2 + $0x8] sm:$0xff]  ;;  %v112_v36 = vld [vmem:[#allocation5 + $0xd0] sm:$0xff] }
  0x37   :  { %316 = vmatpush.msrb.mxu0 %v148_v62  ;;  %362 = vmatpush.msrb.mxu2 %v149_v63  ;;  %v180_v37 = vld [vmem:[#allocation5 + $0x2f0] sm:$0xff]  ;;  %v113_v38 = vld [vmem:[#allocation5 + $0xd8] sm:$0xff] }
  0x38   :  { %339 = vmatpush.msrb.mxu1 %v212_v3  ;;  %385 = vmatpush.msrb.mxu3 %v213_v5  ;;  %v181_v39 = vld [vmem:[#allocation5 + $0x2f8] sm:$0xff]  ;;  %v108_v40 = vld [vmem:[#allocation5 + $0xb0] sm:$0xff] }
  0x39   :  { %317 = vmatpush.msrb.mxu0 %v144_v2  ;;  %363 = vmatpush.msrb.mxu2 %v145_v4  ;;  %v176_v41 = vld [vmem:[#allocation5 + $0x2d0] sm:$0xff]  ;;  %v109_v42 = vld [vmem:[#allocation5 + $0xb8] sm:$0xff] }
  0x3a   :  { %340 = vmatpush.msrb.mxu1 %v208_v7  ;;  %386 = vmatpush.msrb.mxu3 %v209_v9  ;;  %v177_v43 = vld [vmem:[#allocation5 + $0x2d8] sm:$0xff]  ;;  %v104_v44 = vld [vmem:[#allocation5 + $0x90] sm:$0xff] }
  0x3b   :  { %318 = vmatpush.msrb.mxu0 %v140_v6  ;;  %364 = vmatpush.msrb.mxu2 %v141_v8  ;;  %v172_v45 = vld [vmem:[#allocation5 + $0x2b0] sm:$0xff]  ;;  %v105_v46 = vld [vmem:[#allocation5 + $0x98] sm:$0xff] }
  0x3c   :  { %341 = vmatpush.msrb.mxu1 %v204_v11  ;;  %387 = vmatpush.msrb.mxu3 %v205_v13  ;;  %v173_v47 = vld [vmem:[#allocation5 + $0x2b8] sm:$0xff]  ;;  %v803_v48 = vld [vmem:[#allocation2 + $0x10] sm:$0xff]  ;;  %v428_v13 = vld [vmem:[#allocation8 + $0x60] sm:$0xff] }
  0x3d   :  { %319 = vmatpush.msrb.mxu0 %v136_v10  ;;  %365 = vmatpush.msrb.mxu2 %v137_v12  ;;  %v100_v49 = vld [vmem:[#allocation5 + $0x70] sm:$0xff]  ;;  %v101_v51 = vld [vmem:[#allocation5 + $0x78] sm:$0xff] }
  0x3e   :  { %342 = vmatpush.msrb.mxu1 %v200_v15  ;;  %388 = vmatpush.msrb.mxu3 %v201_v17  ;;  %v168_v50 = vld [vmem:[#allocation5 + $0x290] sm:$0xff]  ;;  %v169_v52 = vld [vmem:[#allocation5 + $0x298] sm:$0xff] }
  0x3f   :  { %320 = vmatpush.msrb.mxu0 %v132_v14  ;;  %366 = vmatpush.msrb.mxu2 %v133_v16  ;;  %v807_v53 = vld [vmem:[#allocation2 + $0x18] sm:$0xff]  ;;  %v96_v54 = vld [vmem:[#allocation5 + $0x50] sm:$0xff]  ;;  %v444_v14 = vld [vmem:[#allocation8 + $0xe0] sm:$0xff] }
  0x40   :  { %343 = vmatpush.msrb.mxu1 %v196_v19  ;;  %389 = vmatpush.msrb.mxu3 %v197_v21  ;;  %v164_v55 = vld [vmem:[#allocation5 + $0x270] sm:$0xff]  ;;  %v97_v56 = vld [vmem:[#allocation5 + $0x58] sm:$0xff] }
  0x41   :  { %321 = vmatpush.msrb.mxu0 %v128_v18  ;;  %367 = vmatpush.msrb.mxu2 %v129_v20  ;;  %v165_v57 = vld [vmem:[#allocation5 + $0x278] sm:$0xff]  ;;  %v92_v58 = vld [vmem:[#allocation5 + $0x30] sm:$0xff]  ;;  %v460_v20 = vld [vmem:[#allocation8 + $0x160] sm:$0xff] }
  0x42   :  { %344 = vmatpush.msrb.mxu1 %v192_v23  ;;  %390 = vmatpush.msrb.mxu3 %v193_v25  ;;  %v160_v59 = vld [vmem:[#allocation5 + $0x250] sm:$0xff]  ;;  %v93_v60 = vld [vmem:[#allocation5 + $0x38] sm:$0xff]  ;;  %v424_v23 = vld [vmem:[#allocation8 + $0x40] sm:$0xff] }
  0x43   :  { %322 = vmatpush.msrb.mxu0 %v124_v22  ;;  %368 = vmatpush.msrb.mxu2 %v125_v24  ;;  %v161_v61 = vld [vmem:[#allocation5 + $0x258] sm:$0xff]  ;;  %v88_v62 = vld [vmem:[#allocation5 + $0x10] sm:$0xff]  ;;  %v440_v24 = vld [vmem:[#allocation8 + $0xc0] sm:$0xff] }
  0x44   :  { %345 = vmatpush.msrb.mxu1 %v188_v27  ;;  %391 = vmatpush.msrb.mxu3 %v189_v29  ;;  %v156_v63 = vld [vmem:[#allocation5 + $0x230] sm:$0xff]  ;;  %v89_v0 = vld [vmem:[#allocation5 + $0x18] sm:$0xff] }
  0x45   :  { %323 = vmatpush.msrb.mxu0 %v120_v26  ;;  %369 = vmatpush.msrb.mxu2 %v121_v28  ;;  %v157_v1 = vld [vmem:[#allocation5 + $0x238] sm:$0xff]  ;;  %v152_v2 = vld [vmem:[#allocation5 + $0x210] sm:$0xff] }
  0x46   :  { %240 = vmatmul.f32.vlgmr.msra.gmra.mxu0 %v795_v30  ;;  %286 = vmatmul.f32.vlgmr.msra.gmra.mxu2 %v795_v30  ;;  %v153_v3 = vld [vmem:[#allocation5 + $0x218] sm:$0xff]  ;;  %v429_v11 = vld [vmem:[#allocation8 + $0x68] sm:$0xff] }
  0x47   :  { %324 = vmatpush.msrb.mxu0 %v116_v31  ;;  %346 = vmatpush.msrb.mxu1 %v184_v32  ;;  %v431_v4 = vld [vmem:[#allocation8 + $0x78] sm:$0xff]  ;;  %v430_v8 = vld [vmem:[#allocation8 + $0x70] sm:$0xff]  ;;  %v445_v12 = vld [vmem:[#allocation8 + $0xe8] sm:$0xff] }
  0x48   :  { %370 = vmatpush.msrb.mxu2 %v117_v33  ;;  %392 = vmatpush.msrb.mxu3 %v185_v34  ;;  %v447_v5 = vld [vmem:[#allocation8 + $0xf8] sm:$0xff]  ;;  %v446_v9 = vld [vmem:[#allocation8 + $0xf0] sm:$0xff]  ;;  %v461_v17 = vld [vmem:[#allocation8 + $0x168] sm:$0xff] }
  0x49   :  { %263 = vmatmul.f32.vlgmr.msra.gmra.mxu1 %v799_v35  ;;  %309 = vmatmul.f32.vlgmr.msra.gmra.mxu3 %v799_v35  ;;  %v463_v6 = vld [vmem:[#allocation8 + $0x178] sm:$0xff]  ;;  %v462_v10 = vld [vmem:[#allocation8 + $0x170] sm:$0xff]  ;;  %v425_v21 = vld [vmem:[#allocation8 + $0x48] sm:$0xff] }
  0x4a   :  { %325 = vmatpush.msrb.mxu0 %v112_v36  ;;  %347 = vmatpush.msrb.mxu1 %v180_v37  ;;  %v479_v7 = vld [vmem:[#allocation8 + $0x1f8] sm:$0xff]  ;;  %v426_v18 = vld [vmem:[#allocation8 + $0x50] sm:$0xff]  ;;  %v441_v22 = vld [vmem:[#allocation8 + $0xc8] sm:$0xff] }
  0x4b   :  { %371 = vmatpush.msrb.mxu2 %v113_v38  ;;  %393 = vmatpush.msrb.mxu3 %v181_v39  ;;  %v427_v15 = vld [vmem:[#allocation8 + $0x58] sm:$0xff]  ;;  %v442_v19 = vld [vmem:[#allocation8 + $0xd0] sm:$0xff]  ;;  %v421_v28 = vld [vmem:[#allocation8 + $0x28] sm:$0xff] }
  0x4c   :  { %326 = vmatpush.msrb.mxu0 %v108_v40  ;;  %348 = vmatpush.msrb.mxu1 %v176_v41  ;;  %v443_v16 = vld [vmem:[#allocation8 + $0xd8] sm:$0xff]  ;;  %v422_v27 = vld [vmem:[#allocation8 + $0x30] sm:$0xff]  ;;  %v420_v32 = vld [vmem:[#allocation8 + $0x20] sm:$0xff] }
  0x4d   :  { %372 = vmatpush.msrb.mxu2 %v109_v42  ;;  %394 = vmatpush.msrb.mxu3 %v177_v43  ;;  %v423_v25 = vld [vmem:[#allocation8 + $0x38] sm:$0xff]  ;;  %v438_v29 = vld [vmem:[#allocation8 + $0xb0] sm:$0xff]  ;;  %v437_v33 = vld [vmem:[#allocation8 + $0xa8] sm:$0xff] }
  0x4e   :  { %327 = vmatpush.msrb.mxu0 %v104_v44  ;;  %349 = vmatpush.msrb.mxu1 %v172_v45  ;;  %v439_v26 = vld [vmem:[#allocation8 + $0xb8] sm:$0xff]  ;;  %v478_v31 = vld [vmem:[#allocation8 + $0x1f0] sm:$0xff]  ;;  %v436_v37 = vld [vmem:[#allocation8 + $0xa0] sm:$0xff] }
  0x4f   :  { %373 = vmatpush.msrb.mxu2 %v105_v46  ;;  %395 = vmatpush.msrb.mxu3 %v173_v47  ;;  %v458_v34 = vld [vmem:[#allocation8 + $0x150] sm:$0xff]  ;;  %v419_v36 = vld [vmem:[#allocation8 + $0x18] sm:$0xff]  ;;  %v457_v38 = vld [vmem:[#allocation8 + $0x148] sm:$0xff] }
  0x50   :  { %243 = vmatmul.f32.gmra.mxu0 %v803_v48  ;;  %289 = vmatmul.f32.gmra.mxu2 %v803_v48  ;;  %v476_v39 = vld [vmem:[#allocation8 + $0x1e0] sm:$0xff]  ;;  %v418_v40 = vld [vmem:[#allocation8 + $0x10] sm:$0xff]  ;;  %v435_v41 = vld [vmem:[#allocation8 + $0x98] sm:$0xff] }
  0x51   :  { %328 = vmatpush.msrb.mxu0 %v100_v49  ;;  %350 = vmatpush.msrb.mxu1 %v168_v50  ;;  %v456_v42 = vld [vmem:[#allocation8 + $0x140] sm:$0xff]  ;;  %v475_v43 = vld [vmem:[#allocation8 + $0x1d8] sm:$0xff]  ;;  %v417_v44 = vld [vmem:[#allocation8 + $0x8] sm:$0xff] }
  0x52   :  { %374 = vmatpush.msrb.mxu2 %v101_v51  ;;  %396 = vmatpush.msrb.mxu3 %v169_v52  ;;  %v434_v45 = vld [vmem:[#allocation8 + $0x90] sm:$0xff]  ;;  %v455_v46 = vld [vmem:[#allocation8 + $0x138] sm:$0xff]  ;;  %v433_v49 = vld [vmem:[#allocation8 + $0x88] sm:$0xff] }
  0x53   :  { %266 = vmatmul.f32.gmra.mxu1 %v807_v53  ;;  %312 = vmatmul.f32.gmra.mxu3 %v807_v53  ;;  %v474_v47 = vld [vmem:[#allocation8 + $0x1d0] sm:$0xff]  ;;  %v473_v51 = vld [vmem:[#allocation8 + $0x1c8] sm:$0xff]  ;;  %v432_v52 = vld [vmem:[#allocation8 + $0x80] sm:$0xff] }
  0x54   :  { %329 = vmatpush.msrb.mxu0 %v96_v54  ;;  %351 = vmatpush.msrb.mxu1 %v164_v55  ;;  %v454_v50 = vld [vmem:[#allocation8 + $0x130] sm:$0xff]  ;;  %v472_v54 = vld [vmem:[#allocation8 + $0x1c0] sm:$0xff] }
  0x55   :  { %375 = vmatpush.msrb.mxu2 %v97_v56  ;;  %397 = vmatpush.msrb.mxu3 %v165_v57  ;;  %v452_v55 = vld [vmem:[#allocation8 + $0x120] sm:$0xff]  ;;  %v471_v56 = vld [vmem:[#allocation8 + $0x1b8] sm:$0xff] }
  0x56   :  { %330 = vmatpush.msrb.mxu0 %v92_v58  ;;  %352 = vmatpush.msrb.mxu1 %v160_v59  ;;  %v451_v57 = vld [vmem:[#allocation8 + $0x118] sm:$0xff]  ;;  %v470_v58 = vld [vmem:[#allocation8 + $0x1b0] sm:$0xff] }
  0x57   :  { %376 = vmatpush.msrb.mxu2 %v93_v60  ;;  %398 = vmatpush.msrb.mxu3 %v161_v61  ;;  %v450_v59 = vld [vmem:[#allocation8 + $0x110] sm:$0xff]  ;;  %v469_v60 = vld [vmem:[#allocation8 + $0x1a8] sm:$0xff] }
  0x58   :  { %331 = vmatpush.msrb.mxu0 %v88_v62  ;;  %353 = vmatpush.msrb.mxu1 %v156_v63  ;;  %v449_v61 = vld [vmem:[#allocation8 + $0x108] sm:$0xff]  ;;  %v468_v62 = vld [vmem:[#allocation8 + $0x1a0] sm:$0xff] }
  0x59   :  { %377 = vmatpush.msrb.mxu2 %v89_v0  ;;  %399 = vmatpush.msrb.mxu3 %v157_v1  ;;  %v448_v63 = vld [vmem:[#allocation8 + $0x100] sm:$0xff]  ;;  %v467_v0 = vld [vmem:[#allocation8 + $0x198] sm:$0xff] }
  0x5a   :  { %332 = vmatmul.f32.vlgmr.msrb.gmra.mxu0 %v795_v30  ;;  %378 = vmatmul.f32.vlgmr.msrb.gmra.mxu2 %v795_v30  ;;  %v459_v30 = vld [vmem:[#allocation8 + $0x158] sm:$0xff] }
  0x5b   :  { %354 = vmatpush.msrb.mxu1 %v152_v2  ;;  %400 = vmatpush.msrb.mxu3 %v153_v3  ;;  %v214_v1 = vld [vmem:[#allocation7] sm:$0xf]  ;;  %v466_v2 = vld [vmem:[#allocation8 + $0x190] sm:$0xff] }
  0x5c   :  { %355 = vmatmul.f32.vlgmr.msrb.gmra.mxu1 %v799_v35  ;;  %401 = vmatmul.f32.vlgmr.msrb.gmra.mxu3 %v799_v35  ;;  %v477_v35 = vld [vmem:[#allocation8 + $0x1e8] sm:$0xff]  ;;  %v216_v3 = vperm.slane %v214_v1, 0 }
  0x5d   :  { %484 = vmatpush.msra.mxu0 %v431_v4  ;;  %507 = vmatpush.msra.mxu1 %v447_v5  ;;  %v465_v4 = vld [vmem:[#allocation8 + $0x188] sm:$0xff]  ;;  %v464_v5 = vld [vmem:[#allocation8 + $0x180] sm:$0xff] }
  0x5e   :  { %530 = vmatpush.msra.mxu2 %v463_v6  ;;  %553 = vmatpush.msra.mxu3 %v479_v7 }
  0x5f   :  { %485 = vmatpush.msra.mxu0 %v430_v8  ;;  %508 = vmatpush.msra.mxu1 %v446_v9  ;;  %v217_v9 = vperm.slane %v214_v1, 1 }
  0x60   :  { %531 = vmatpush.msra.mxu2 %v462_v10  ;;  %554 = vmatpush.msra.mxu3 %v478_v31 }
  0x61   :  { %486 = vmatpush.msra.mxu0 %v429_v11  ;;  %509 = vmatpush.msra.mxu1 %v445_v12 }
  0x62   :  { %335 = vmatmul.f32.gmra.mxu0 %v803_v48  ;;  %381 = vmatmul.f32.gmra.mxu2 %v803_v48  ;;  %v416_v48 = vld [vmem:[#allocation8] sm:$0xff] }
  0x63   :  { %487 = vmatpush.msra.mxu0 %v428_v13  ;;  %510 = vmatpush.msra.mxu1 %v444_v14 }
  0x64   :  { %358 = vmatmul.f32.gmra.mxu1 %v807_v53  ;;  %404 = vmatmul.f32.gmra.mxu3 %v807_v53  ;;  %v453_v53 = vld [vmem:[#allocation8 + $0x128] sm:$0xff] }
  0x65   :  { %488 = vmatpush.msra.mxu0 %v427_v15  ;;  %511 = vmatpush.msra.mxu1 %v443_v16 }
  0x66   :  { %532 = vmatpush.msra.mxu2 %v461_v17  ;;  %555 = vmatpush.msra.mxu3 %v477_v35 }
  0x67   :  { %489 = vmatpush.msra.mxu0 %v426_v18  ;;  %512 = vmatpush.msra.mxu1 %v442_v19 }
  0x68   :  { %533 = vmatpush.msra.mxu2 %v460_v20  ;;  %556 = vmatpush.msra.mxu3 %v476_v39 }
  0x69   :  { %490 = vmatpush.msra.mxu0 %v425_v21  ;;  %513 = vmatpush.msra.mxu1 %v441_v22 }
  0x6a   :  { %534 = vmatpush.msra.mxu2 %v459_v30  ;;  %557 = vmatpush.msra.mxu3 %v475_v43 }
  0x6b   :  { %491 = vmatpush.msra.mxu0 %v424_v23  ;;  %514 = vmatpush.msra.mxu1 %v440_v24  ;;  %v218_v24 = vperm.slane %v214_v1, 2 }
  0x6c   :  { %535 = vmatpush.msra.mxu2 %v458_v34  ;;  %558 = vmatpush.msra.mxu3 %v474_v47 }
  0x6d   :  { %492 = vmatpush.msra.mxu0 %v423_v25  ;;  %515 = vmatpush.msra.mxu1 %v439_v26 }
  0x6e   :  { %536 = vmatpush.msra.mxu2 %v457_v38  ;;  %559 = vmatpush.msra.mxu3 %v473_v51 }
  0x6f   :  { %493 = vmatpush.msra.mxu0 %v422_v27  ;;  %516 = vmatpush.msra.mxu1 %v438_v29 }
  0x70   :  { %537 = vmatpush.msra.mxu2 %v456_v42  ;;  %560 = vmatpush.msra.mxu3 %v472_v54 }
  0x71   :  { %494 = vmatpush.msra.mxu0 %v421_v28  ;;  %517 = vmatpush.msra.mxu1 %v437_v33 }
  0x72   :  { %538 = vmatpush.msra.mxu2 %v455_v46  ;;  %561 = vmatpush.msra.mxu3 %v471_v56 }
  0x73   :  { %495 = vmatpush.msra.mxu0 %v420_v32  ;;  %518 = vmatpush.msra.mxu1 %v436_v37  ;;  %v219_v32 = vperm.slane %v214_v1, 3 }
  0x74   :  { %539 = vmatpush.msra.mxu2 %v454_v50  ;;  %562 = vmatpush.msra.mxu3 %v470_v58  ;;  %v610_v50 = vld [vmem:[%s832_s4] ss:$0 sm:$0xff] }
  0x75   :  { %496 = vmatpush.msra.mxu0 %v419_v36  ;;  %519 = vmatpush.msra.mxu1 %v435_v41 }
  0x76   :  { %540 = vmatpush.msra.mxu2 %v453_v53  ;;  %563 = vmatpush.msra.mxu3 %v469_v60 }
  0x77   :  { %497 = vmatpush.msra.mxu0 %v418_v40  ;;  %520 = vmatpush.msra.mxu1 %v434_v45 }
  0x78   :  { %541 = vmatpush.msra.mxu2 %v452_v55  ;;  %564 = vmatpush.msra.mxu3 %v468_v62 }
  0x79   :  { %498 = vmatpush.msra.mxu0 %v417_v44  ;;  %521 = vmatpush.msra.mxu1 %v433_v49 }
  0x7a   :  { %542 = vmatpush.msra.mxu2 %v451_v57  ;;  %565 = vmatpush.msra.mxu3 %v467_v0 }
  0x7b   :  { %499 = vmatpush.msra.mxu0 %v416_v48  ;;  %522 = vmatpush.msra.mxu1 %v432_v52 }
  0x7c   :  { %543 = vmatpush.msra.mxu2 %v450_v59  ;;  %566 = vmatpush.msra.mxu3 %v466_v2 }
  0x7e   :  { %544 = vmatpush.msra.mxu2 %v449_v61  ;;  %567 = vmatpush.msra.mxu3 %v465_v4 }
  0x80   :  { %545 = vmatpush.msra.mxu2 %v448_v63  ;;  %568 = vmatpush.msra.mxu3 %v464_v5 }
  0xc3   :  { %v241_v6 = vpop.f32.mrf.mxu0 }
  0xc4   :  { %v242_v7 = vadd.f32 %v241_v6, %v216_v3 }
  0xc6   :  { %v264_v8 = vpop.f32.mrf.mxu1 }
  0xc7   :  { %v265_v10 = vadd.f32 %v264_v8, %v242_v7 }
  0xc9   :  { %v408_v11 = vmax.f32 %v265_v10, 0.0  ;;  %v287_v12 = vpop.f32.mrf.mxu2 }
  0xca   :  { %v288_v13 = vadd.f32 %v287_v12, %v217_v9 }
  0xcb   :  { %500 = vmatmul.f32.vlgmr.msra.gmra.mxu0 %v408_v11 }
  0xcc   :  { %v310_v14 = vpop.f32.mrf.mxu3 }
  0xcd   :  { %v244_v15 = vpop.f32.mrf.mxu0  ;;  %v311_v16 = vadd.f32 %v310_v14, %v288_v13 }
  0xce   :  { %v245_v17 = vadd.f32 %v244_v15, %v216_v3 }
  0xcf   :  { %v409_v18 = vmax.f32 %v311_v16, 0.0 }
  0xd0   :  { %v267_v19 = vpop.f32.mrf.mxu1 }
  0xd1   :  { %v268_v20 = vadd.f32 %v267_v19, %v245_v17  ;;  %523 = vmatmul.f32.vlgmr.msra.gmra.mxu1 %v409_v18 }
  0xd3   :  { %v412_v21 = vmax.f32 %v268_v20, 0.0  ;;  %v290_v22 = vpop.f32.mrf.mxu2 }
  0xd4   :  { %v291_v23 = vadd.f32 %v290_v22, %v217_v9 }
  0xd5   :  { %503 = vmatmul.f32.gmra.mxu0 %v412_v21 }
  0xd6   :  { %v313_v25 = vpop.f32.mrf.mxu3 }
  0xd7   :  { %v314_v26 = vadd.f32 %v313_v25, %v291_v23  ;;  %v333_v27 = vpop.f32.mrf.mxu0 }
  0xd8   :  { %v334_v28 = vadd.f32 %v333_v27, %v218_v24 }
  0xd9   :  { %v413_v29 = vmax.f32 %v314_v26, 0.0  ;;  %v356_v30 = vpop.f32.mrf.mxu1 }
  0xda   :  { %v357_v31 = vadd.f32 %v356_v30, %v334_v28 }
  0xdb   :  { %526 = vmatmul.f32.gmra.mxu1 %v413_v29 }
  0xdc   :  { %v410_v33 = vmax.f32 %v357_v31, 0.0 }
  0xdd   :  { %v379_v34 = vpop.f32.mrf.mxu2 }
  0xde   :  { %v380_v35 = vadd.f32 %v379_v34, %v219_v32  ;;  %546 = vmatmul.f32.vlgmr.msra.gmra.mxu2 %v410_v33 }
  0xdf   :  { %v336_v36 = vpop.f32.mrf.mxu0  ;;  %v402_v37 = vpop.f32.mrf.mxu3 }
  0xe0   :  { %v337_v38 = vadd.f32 %v336_v36, %v218_v24  ;;  %v403_v39 = vadd.f32 %v402_v37, %v380_v35 }
  0xe1   :  { %v359_v40 = vpop.f32.mrf.mxu1 }
  0xe2   :  { %v411_v41 = vmax.f32 %v403_v39, 0.0  ;;  %v360_v42 = vadd.f32 %v359_v40, %v337_v38 }
  0xe4   :  { %v414_v43 = vmax.f32 %v360_v42, 0.0  ;;  %569 = vmatmul.f32.vlgmr.msra.gmra.mxu3 %v411_v41 }
  0xe5   :  { %v382_v44 = vpop.f32.mrf.mxu2 }
  0xe6   :  { %v383_v45 = vadd.f32 %v382_v44, %v219_v32  ;;  %549 = vmatmul.f32.gmra.mxu2 %v414_v43 }
  0xe7   :  { %v405_v46 = vpop.f32.mrf.mxu3 }
  0xe8   :  { %v406_v47 = vadd.f32 %v405_v46, %v383_v45 }
  0xea   :  { %v415_v48 = vmax.f32 %v406_v47, 0.0 }
  0xec   :  { %572 = vmatmul.f32.gmra.mxu3 %v415_v48 }
 0x148   :  { %v501_v49 = vpop.f32.mrf.mxu0 }
 0x149   :  { %v502_v52 = vadd.f32 %v610_v50, %v501_v49 }
 0x14e   :  { %v524_v51 = vpop.f32.mrf.mxu1 }
 0x14f   :  { %v525_v54 = vadd.f32 %v524_v51, %v502_v52 }
 0x152   :  { %v504_v55 = vpop.f32.mrf.mxu0 }
 0x153   :  { %v505_v58 = vadd.f32 %v610_v50, %v504_v55 }
 0x158   :  { %v527_v60 = vpop.f32.mrf.mxu1 }
 0x159   :  { %v528_v62 = vadd.f32 %v527_v60, %v505_v58 }
 0x161   :  { %v547_v53 = vpop.f32.mrf.mxu2 }
 0x162   :  { %v548_v56 = vadd.f32 %v547_v53, %v525_v54 }
 0x167   :  { %v570_v57 = vpop.f32.mrf.mxu3 }
 0x168   :  { %v571_v59 = vadd.f32 %v570_v57, %v548_v56 }
 0x169   :  { %v550_v61 = vpop.f32.mrf.mxu2 }
 0x16a   :  { %576 = vst [vmem:[#allocation10] sm:$0xff] %v571_v59  ;;  %v551_v63 = vadd.f32 %v550_v61, %v528_v62 }
 0x16f   :  { %v573_v0 = vpop.f32.mrf.mxu3 }
 0x170   :  { %v574_v1 = vadd.f32 %v573_v0, %v551_v63 }
 0x172   :  { %577 = vst [vmem:[#allocation10 + $0x8] sm:$0xff] %v574_v1 }
 0x173   :  { %590 = dma.vmem_to_hbm [thread:$0]  %s583_s18, 256, %s585_s21, [#allocation4], %s747_s15, %s747_s15, %s748_s16  }
 0x174   :  { %737 = dma.done.wait [#allocation4], 256  }
 0x175   :  { %738 = vsyncadd [#allocation4], 4294967040 }
 0x176   :  { %595 = vsyncpa [#allocation3], 1 }
 0x177   :  { %596 = vsyncpa [#allocation6], 1 }
 0x178   :  { %597 = vsyncpa [#allocation9], 1 }
 0x179   :  { %598 = vsyncpa [#allocation4], 1 }

</bundles_post_ra>
